<compile_context>
chip_gen: v5e
topology: v5e:2x2
jax: 0.10.0
libtpu: 0.0.40
codegen_flags: <defaults>
</compile_context>

<pallas_src>
import jax
import jax.numpy as jnp
from jax.experimental import pallas as pl
from jax.experimental.pallas import tpu as pltpu

KH, KW = 4, 4
STRIDE = 2
DILATION = 5
PADDING = 7
HALO = 4  # max |row/col offset| of a contributing tap after phase decomposition


def _phase_taps():
    """Per output-parity phase (po, pw): the 4 contributing (kh, kw) taps and
    their input-pixel offsets (dh, dw) ∈ {-4, -1, +1, +4}."""
    phases = []
    for po in range(STRIDE):
        hs = [(kh, (po + PADDING - DILATION * kh) // STRIDE)
              for kh in range(KH) if (po + PADDING - DILATION * kh) % STRIDE == 0]
        for pw in range(STRIDE):
            ws = [(kw, (pw + PADDING - DILATION * kw) // STRIDE)
                  for kw in range(KW) if (pw + PADDING - DILATION * kw) % STRIDE == 0]
            phases.append([(kh, kw, dh, dw) for (kh, dh) in hs for (kw, dw) in ws])
    return phases


def deconv_block5(x_nchw, weight, alpha, *, operand_dtype=jnp.bfloat16):
    """x_nchw: (N, Cin, H, W); weight: (Cin, Cout, KH, KW) (PyTorch ConvTranspose2d,
    bias=False); alpha: shared PReLU slope (nn.PReLU() default: 1 parameter)."""
    N, Cin, H, W = x_nchw.shape
    assert weight.shape[0] == Cin and weight.shape[2:] == (KH, KW)
    Cout = weight.shape[1]
    OH = (H - 1) * STRIDE - 2 * PADDING + DILATION * (KH - 1) + 1
    OW = (W - 1) * STRIDE - 2 * PADDING + DILATION * (KW - 1) + 1
    assert OH == STRIDE * H and OW == STRIDE * W

    phases = _phase_taps()
    n_phase = len(phases)        # 4
    n_tap = len(phases[0])       # 4

    Hp, Wp = H + 2 * HALO, W + 2 * HALO
    HWp = H * Wp                                  # lanes of one phase's output
    # Flattened input length: must cover the largest tap slice end; round to 128.
    lp_min = Hp * Wp + 2 * HALO
    Lp = -(-lp_min // 128) * 128

    # ---- HBM-resident operands in bf16 (kernel is memory-bound) -------------
    xq = x_nchw.astype(operand_dtype)
    xp = jnp.pad(xq, ((0, 0), (0, 0), (HALO, HALO), (HALO, HALO)))   # (N,Cin,Hp,Wp)
    xflat = jnp.pad(xp.reshape(N, Cin, Hp * Wp),
                    ((0, 0), (0, 0), (0, Lp - Hp * Wp)))             # (N,Cin,Lp)

    wq = weight.astype(operand_dtype)
    # (n_phase*n_tap, Cout, Cin), ordered (phase-major, tap-minor)
    w_stack = jnp.stack([wq[:, :, kh, kw].T
                         for taps in phases for (kh, kw, _, _) in taps], axis=0)

    # Static flattened start offset of every (phase, tap) slice.
    bases = tuple(tuple((dh + HALO) * Wp + (dw + HALO) for (_, _, dh, dw) in taps)
                  for taps in phases)

    alpha_arr = jnp.full((1,), alpha, jnp.float32)

    def kernel(x_ref, w_ref, alpha_ref, o_ref):
        # x_ref:     (1, Cin, Lp)            bf16, padded+flattened input (one sample)
        # w_ref:     (n_phase*n_tap, Cout, Cin) bf16, resident weight table
        # alpha_ref: (1,)                    f32, SMEM PReLU slope
        # o_ref:     (1, n_phase, Cout, HWp) f32, phase-major output (lane-dense)
        a = alpha_ref[0]
        for p in range(n_phase):
            acc = None
            for t in range(n_tap):
                base = bases[p][t]
                slab = x_ref[0, :, base:base + HWp]                  # (Cin, HWp)
                d = jnp.dot(w_ref[p * n_tap + t], slab,
                            preferred_element_type=jnp.float32)      # (Cout, HWp)
                acc = d if acc is None else acc + d
            o_ref[0, p] = jnp.where(acc >= 0.0, acc, a * acc)

    cost = pl.CostEstimate(
        flops=2 * N * n_phase * n_tap * Cout * Cin * HWp,
        transcendentals=0,
        bytes_accessed=(xflat.size * xflat.dtype.itemsize
                        + w_stack.size * w_stack.dtype.itemsize
                        + N * n_phase * Cout * HWp * 4),
    )

    out4 = pl.pallas_call(
        kernel,
        out_shape=jax.ShapeDtypeStruct((N, n_phase, Cout, HWp), jnp.float32),
        grid=(N,),
        in_specs=[
            pl.BlockSpec((1, Cin, Lp), lambda n: (n, 0, 0)),
            # constant block index -> weights DMA'd once and stay VMEM-resident
            pl.BlockSpec((n_phase * n_tap, Cout, Cin), lambda n: (0, 0, 0)),
            pl.BlockSpec(memory_space=pltpu.MemorySpace.SMEM),
        ],
        out_specs=pl.BlockSpec((1, n_phase, Cout, HWp), lambda n: (n, 0, 0, 0)),
        compiler_params=pltpu.CompilerParams(dimension_semantics=("parallel",)),
        cost_estimate=cost,
    )(xflat, w_stack, alpha_arr)

    # De-interleave phases back to NCHW and drop the Wp-W junk columns produced
    # by the flattened-slice gather.  One fused XLA pass over the output.
    out = out4.reshape(N, STRIDE, STRIDE, Cout, H, Wp)[..., :W]
    out = out.transpose(0, 3, 4, 1, 5, 2).reshape(N, Cout, OH, OW)
    return out


def _reference(x_nchw, weight, alpha, operand_dtype=jnp.bfloat16):
    """Direct scatter-style ConvTranspose2d + PReLU, on identically quantized inputs."""
    N, Cin, H, W = x_nchw.shape
    Cout = weight.shape[1]
    OH = (H - 1) * STRIDE - 2 * PADDING + DILATION * (KH - 1) + 1
    OW = (W - 1) * STRIDE - 2 * PADDING + DILATION * (KW - 1) + 1
    x = jnp.transpose(x_nchw.astype(operand_dtype).astype(jnp.float32), (0, 2, 3, 1))
    w = weight.astype(operand_dtype).astype(jnp.float32)
    out = jnp.zeros((N, OH, OW, Cout), jnp.float32)
    ih = jnp.arange(H)
    iw = jnp.arange(W)
    for kh in range(KH):
        for kw in range(KW):
            oh = ih * STRIDE - PADDING + kh * DILATION
            ow = iw * STRIDE - PADDING + kw * DILATION
            mh = ((oh >= 0) & (oh < OH)).astype(jnp.float32)
            mw = ((ow >= 0) & (ow < OW)).astype(jnp.float32)
            contrib = jnp.einsum('nhwi,io->nhwo', x, w[:, :, kh, kw],
                                 precision=jax.lax.Precision.HIGHEST)
            contrib = contrib * mh[None, :, None, None] * mw[None, None, :, None]
            out = out.at[:, jnp.clip(oh, 0, OH - 1)[:, None],
                         jnp.clip(ow, 0, OW - 1)[None, :], :].add(contrib)
    out = jnp.where(out >= 0.0, out, alpha * out)
    return jnp.transpose(out, (0, 3, 1, 2))


if __name__ == "__main__":
    key = jax.random.PRNGKey(0)
    kx, kw = jax.random.split(key)

    N, Cin, Cout, H, W = 2, 4, 8, 16, 16
    x = jax.random.normal(kx, (N, Cin, H, W), jnp.float32)
    # ConvTranspose2d weight shape: (in_channels, out_channels, kH, kW), bias=False
    weight = 0.1 * jax.random.normal(kw, (Cin, Cout, KH, KW), jnp.float32)
    alpha = 0.25  # nn.PReLU() default: a single shared parameter, init 0.25

    out = jax.block_until_ready(deconv_block5(x, weight, alpha))
    assert out.shape == (N, Cout, 2 * H, 2 * W), out.shape

    ref = _reference(x, weight, alpha)
    max_err = float(jnp.max(jnp.abs(out - ref)))
    assert jnp.allclose(out, ref, atol=1e-4, rtol=1e-4), max_err

    print("KERNEL_OK")
</pallas_src>

<mosaic_0001>
module attributes {stable_mosaic.version = 11 : i64} {
  func.func @kernel(%arg0: i32, %arg1: memref<1x4x640xbf16, #tpu.memory_space<vmem>>, %arg2: memref<16x8x4xbf16, #tpu.memory_space<vmem>>, %arg3: memref<1xf32, #tpu.memory_space<smem>>, %arg4: memref<1x4x8x384xf32, #tpu.memory_space<vmem>>) attributes {dimension_semantics = [#tpu.dimension_semantics<parallel>], iteration_bounds = array<i64: 2>, scalar_prefetch = 0 : i64, scratch_operands = 0 : i64, tpu.core_type = #tpu.core_type<tc>, window_params = [{transform_indices = @transform_0, window_bounds = array<i64: 1, 4, 640>}, {pipeline_mode = #tpu.pipeline_mode<synchronous>, transform_indices = @transform_1, window_bounds = array<i64: 16, 8, 4>}, {transform_indices = @transform_2, window_bounds = array<i64: 1>}, {transform_indices = @transform_3, window_bounds = array<i64: 1, 4, 8, 384>}]} {
    %c0 = arith.constant 0 : index
    %0 = memref.load %arg3[%c0] : memref<1xf32, #tpu.memory_space<smem>>
    %c0_0 = arith.constant 0 : index
    %c0_1 = arith.constant 0 : index
    %c125 = arith.constant 125 : index
    %1 = vector.load %arg1[%c0_0, %c0_1, %c125] : memref<1x4x640xbf16, #tpu.memory_space<vmem>>, vector<1x4x384xbf16>
    %2 = vector.shape_cast %1 : vector<1x4x384xbf16> to vector<4x384xbf16>
    %c0_2 = arith.constant 0 : index
    %c0_3 = arith.constant 0 : index
    %c0_4 = arith.constant 0 : index
    %3 = vector.load %arg2[%c0_2, %c0_3, %c0_4] : memref<16x8x4xbf16, #tpu.memory_space<vmem>>, vector<1x8x4xbf16>
    %4 = vector.shape_cast %3 : vector<1x8x4xbf16> to vector<8x4xbf16>
    %cst = arith.constant dense<0.000000e+00> : vector<8x384xf32>
    %5 = tpu.matmul %4, %2, %cst {dimension_numbers = #tpu.dot_dimension_numbers<[1], [0], [0], [1], [0, 0, 1, 1], [], []>} : vector<8x4xbf16>, vector<4x384xbf16>, vector<8x384xf32> -> vector<8x384xf32>
    %c0_5 = arith.constant 0 : index
    %c0_6 = arith.constant 0 : index
    %c120 = arith.constant 120 : index
    %6 = vector.load %arg1[%c0_5, %c0_6, %c120] : memref<1x4x640xbf16, #tpu.memory_space<vmem>>, vector<1x4x384xbf16>
    %7 = vector.shape_cast %6 : vector<1x4x384xbf16> to vector<4x384xbf16>
    %c1 = arith.constant 1 : index
    %c0_7 = arith.constant 0 : index
    %c0_8 = arith.constant 0 : index
    %8 = vector.load %arg2[%c1, %c0_7, %c0_8] : memref<16x8x4xbf16, #tpu.memory_space<vmem>>, vector<1x8x4xbf16>
    %9 = vector.shape_cast %8 : vector<1x8x4xbf16> to vector<8x4xbf16>
    %cst_9 = arith.constant dense<0.000000e+00> : vector<8x384xf32>
    %10 = tpu.matmul %9, %7, %cst_9 {dimension_numbers = #tpu.dot_dimension_numbers<[1], [0], [0], [1], [0, 0, 1, 1], [], []>} : vector<8x4xbf16>, vector<4x384xbf16>, vector<8x384xf32> -> vector<8x384xf32>
    %11 = arith.addf %5, %10 : vector<8x384xf32>
    %c0_10 = arith.constant 0 : index
    %c0_11 = arith.constant 0 : index
    %c5 = arith.constant 5 : index
    %12 = vector.load %arg1[%c0_10, %c0_11, %c5] : memref<1x4x640xbf16, #tpu.memory_space<vmem>>, vector<1x4x384xbf16>
    %13 = vector.shape_cast %12 : vector<1x4x384xbf16> to vector<4x384xbf16>
    %c2 = arith.constant 2 : index
    %c0_12 = arith.constant 0 : index
    %c0_13 = arith.constant 0 : index
    %14 = vector.load %arg2[%c2, %c0_12, %c0_13] : memref<16x8x4xbf16, #tpu.memory_space<vmem>>, vector<1x8x4xbf16>
    %15 = vector.shape_cast %14 : vector<1x8x4xbf16> to vector<8x4xbf16>
    %cst_14 = arith.constant dense<0.000000e+00> : vector<8x384xf32>
    %16 = tpu.matmul %15, %13, %cst_14 {dimension_numbers = #tpu.dot_dimension_numbers<[1], [0], [0], [1], [0, 0, 1, 1], [], []>} : vector<8x4xbf16>, vector<4x384xbf16>, vector<8x384xf32> -> vector<8x384xf32>
    %17 = arith.addf %11, %16 : vector<8x384xf32>
    %c0_15 = arith.constant 0 : index
    %c0_16 = arith.constant 0 : index
    %c0_17 = arith.constant 0 : index
    %18 = vector.load %arg1[%c0_15, %c0_16, %c0_17] : memref<1x4x640xbf16, #tpu.memory_space<vmem>>, vector<1x4x384xbf16>
    %19 = vector.shape_cast %18 : vector<1x4x384xbf16> to vector<4x384xbf16>
    %c3 = arith.constant 3 : index
    %c0_18 = arith.constant 0 : index
    %c0_19 = arith.constant 0 : index
    %20 = vector.load %arg2[%c3, %c0_18, %c0_19] : memref<16x8x4xbf16, #tpu.memory_space<vmem>>, vector<1x8x4xbf16>
    %21 = vector.shape_cast %20 : vector<1x8x4xbf16> to vector<8x4xbf16>
    %cst_20 = arith.constant dense<0.000000e+00> : vector<8x384xf32>
    %22 = tpu.matmul %21, %19, %cst_20 {dimension_numbers = #tpu.dot_dimension_numbers<[1], [0], [0], [1], [0, 0, 1, 1], [], []>} : vector<8x4xbf16>, vector<4x384xbf16>, vector<8x384xf32> -> vector<8x384xf32>
    %23 = arith.addf %17, %22 : vector<8x384xf32>
    %cst_21 = arith.constant 0.000000e+00 : f32
    %24 = vector.broadcast %cst_21 : f32 to vector<8x384xf32>
    %25 = arith.cmpf oge, %23, %24 : vector<8x384xf32>
    %26 = vector.broadcast %0 : f32 to vector<8x384xf32>
    %27 = arith.mulf %26, %23 : vector<8x384xf32>
    %28 = arith.select %25, %23, %27 : vector<8x384xi1>, vector<8x384xf32>
    %c0_22 = arith.constant 0 : index
    %c0_23 = arith.constant 0 : index
    %c0_24 = arith.constant 0 : index
    %c0_25 = arith.constant 0 : index
    %29 = vector.load %arg4[%c0_22, %c0_23, %c0_24, %c0_25] : memref<1x4x8x384xf32, #tpu.memory_space<vmem>>, vector<1x1x8x384xf32>
    %30 = vector.shape_cast %29 : vector<1x1x8x384xf32> to vector<8x384xf32>
    %31 = vector.shape_cast %28 : vector<8x384xf32> to vector<1x1x8x384xf32>
    tpu.vector_store %arg4[%c0_22, %c0_23, %c0_24, %c0_25], %31 {strides = array<i32>} : memref<1x4x8x384xf32, #tpu.memory_space<vmem>>, vector<1x1x8x384xf32>,
    %c0_26 = arith.constant 0 : index
    %c0_27 = arith.constant 0 : index
    %c128 = arith.constant 128 : index
    %32 = vector.load %arg1[%c0_26, %c0_27, %c128] : memref<1x4x640xbf16, #tpu.memory_space<vmem>>, vector<1x4x384xbf16>
    %33 = vector.shape_cast %32 : vector<1x4x384xbf16> to vector<4x384xbf16>
    %c4 = arith.constant 4 : index
    %c0_28 = arith.constant 0 : index
    %c0_29 = arith.constant 0 : index
    %34 = vector.load %arg2[%c4, %c0_28, %c0_29] : memref<16x8x4xbf16, #tpu.memory_space<vmem>>, vector<1x8x4xbf16>
    %35 = vector.shape_cast %34 : vector<1x8x4xbf16> to vector<8x4xbf16>
    %cst_30 = arith.constant dense<0.000000e+00> : vector<8x384xf32>
    %36 = tpu.matmul %35, %33, %cst_30 {dimension_numbers = #tpu.dot_dimension_numbers<[1], [0], [0], [1], [0, 0, 1, 1], [], []>} : vector<8x4xbf16>, vector<4x384xbf16>, vector<8x384xf32> -> vector<8x384xf32>
    %c0_31 = arith.constant 0 : index
    %c0_32 = arith.constant 0 : index
    %c123 = arith.constant 123 : index
    %37 = vector.load %arg1[%c0_31, %c0_32, %c123] : memref<1x4x640xbf16, #tpu.memory_space<vmem>>, vector<1x4x384xbf16>
    %38 = vector.shape_cast %37 : vector<1x4x384xbf16> to vector<4x384xbf16>
    %c5_33 = arith.constant 5 : index
    %c0_34 = arith.constant 0 : index
    %c0_35 = arith.constant 0 : index
    %39 = vector.load %arg2[%c5_33, %c0_34, %c0_35] : memref<16x8x4xbf16, #tpu.memory_space<vmem>>, vector<1x8x4xbf16>
    %40 = vector.shape_cast %39 : vector<1x8x4xbf16> to vector<8x4xbf16>
    %cst_36 = arith.constant dense<0.000000e+00> : vector<8x384xf32>
    %41 = tpu.matmul %40, %38, %cst_36 {dimension_numbers = #tpu.dot_dimension_numbers<[1], [0], [0], [1], [0, 0, 1, 1], [], []>} : vector<8x4xbf16>, vector<4x384xbf16>, vector<8x384xf32> -> vector<8x384xf32>
    %42 = arith.addf %36, %41 : vector<8x384xf32>
    %c0_37 = arith.constant 0 : index
    %c0_38 = arith.constant 0 : index
    %c8 = arith.constant 8 : index
    %43 = vector.load %arg1[%c0_37, %c0_38, %c8] : memref<1x4x640xbf16, #tpu.memory_space<vmem>>, vector<1x4x384xbf16>
    %44 = vector.shape_cast %43 : vector<1x4x384xbf16> to vector<4x384xbf16>
    %c6 = arith.constant 6 : index
    %c0_39 = arith.constant 0 : index
    %c0_40 = arith.constant 0 : index
    %45 = vector.load %arg2[%c6, %c0_39, %c0_40] : memref<16x8x4xbf16, #tpu.memory_space<vmem>>, vector<1x8x4xbf16>
    %46 = vector.shape_cast %45 : vector<1x8x4xbf16> to vector<8x4xbf16>
    %cst_41 = arith.constant dense<0.000000e+00> : vector<8x384xf32>
    %47 = tpu.matmul %46, %44, %cst_41 {dimension_numbers = #tpu.dot_dimension_numbers<[1], [0], [0], [1], [0, 0, 1, 1], [], []>} : vector<8x4xbf16>, vector<4x384xbf16>, vector<8x384xf32> -> vector<8x384xf32>
    %48 = arith.addf %42, %47 : vector<8x384xf32>
    %c0_42 = arith.constant 0 : index
    %c0_43 = arith.constant 0 : index
    %c3_44 = arith.constant 3 : index
    %49 = vector.load %arg1[%c0_42, %c0_43, %c3_44] : memref<1x4x640xbf16, #tpu.memory_space<vmem>>, vector<1x4x384xbf16>
    %50 = vector.shape_cast %49 : vector<1x4x384xbf16> to vector<4x384xbf16>
    %c7 = arith.constant 7 : index
    %c0_45 = arith.constant 0 : index
    %c0_46 = arith.constant 0 : index
    %51 = vector.load %arg2[%c7, %c0_45, %c0_46] : memref<16x8x4xbf16, #tpu.memory_space<vmem>>, vector<1x8x4xbf16>
    %52 = vector.shape_cast %51 : vector<1x8x4xbf16> to vector<8x4xbf16>
    %cst_47 = arith.constant dense<0.000000e+00> : vector<8x384xf32>
    %53 = tpu.matmul %52, %50, %cst_47 {dimension_numbers = #tpu.dot_dimension_numbers<[1], [0], [0], [1], [0, 0, 1, 1], [], []>} : vector<8x4xbf16>, vector<4x384xbf16>, vector<8x384xf32> -> vector<8x384xf32>
    %54 = arith.addf %48, %53 : vector<8x384xf32>
    %cst_48 = arith.constant 0.000000e+00 : f32
    %55 = vector.broadcast %cst_48 : f32 to vector<8x384xf32>
    %56 = arith.cmpf oge, %54, %55 : vector<8x384xf32>
    %57 = vector.broadcast %0 : f32 to vector<8x384xf32>
    %58 = arith.mulf %57, %54 : vector<8x384xf32>
    %59 = arith.select %56, %54, %58 : vector<8x384xi1>, vector<8x384xf32>
    %c0_49 = arith.constant 0 : index
    %c1_50 = arith.constant 1 : index
    %c0_51 = arith.constant 0 : index
    %c0_52 = arith.constant 0 : index
    %60 = vector.load %arg4[%c0_49, %c1_50, %c0_51, %c0_52] : memref<1x4x8x384xf32, #tpu.memory_space<vmem>>, vector<1x1x8x384xf32>
    %61 = vector.shape_cast %60 : vector<1x1x8x384xf32> to vector<8x384xf32>
    %62 = vector.shape_cast %59 : vector<8x384xf32> to vector<1x1x8x384xf32>
    tpu.vector_store %arg4[%c0_49, %c1_50, %c0_51, %c0_52], %62 {strides = array<i32>} : memref<1x4x8x384xf32, #tpu.memory_space<vmem>>, vector<1x1x8x384xf32>,
    %c0_53 = arith.constant 0 : index
    %c0_54 = arith.constant 0 : index
    %c197 = arith.constant 197 : index
    %63 = vector.load %arg1[%c0_53, %c0_54, %c197] : memref<1x4x640xbf16, #tpu.memory_space<vmem>>, vector<1x4x384xbf16>
    %64 = vector.shape_cast %63 : vector<1x4x384xbf16> to vector<4x384xbf16>
    %c8_55 = arith.constant 8 : index
    %c0_56 = arith.constant 0 : index
    %c0_57 = arith.constant 0 : index
    %65 = vector.load %arg2[%c8_55, %c0_56, %c0_57] : memref<16x8x4xbf16, #tpu.memory_space<vmem>>, vector<1x8x4xbf16>
    %66 = vector.shape_cast %65 : vector<1x8x4xbf16> to vector<8x4xbf16>
    %cst_58 = arith.constant dense<0.000000e+00> : vector<8x384xf32>
    %67 = tpu.matmul %66, %64, %cst_58 {dimension_numbers = #tpu.dot_dimension_numbers<[1], [0], [0], [1], [0, 0, 1, 1], [], []>} : vector<8x4xbf16>, vector<4x384xbf16>, vector<8x384xf32> -> vector<8x384xf32>
    %c0_59 = arith.constant 0 : index
    %c0_60 = arith.constant 0 : index
    %c192 = arith.constant 192 : index
    %68 = vector.load %arg1[%c0_59, %c0_60, %c192] : memref<1x4x640xbf16, #tpu.memory_space<vmem>>, vector<1x4x384xbf16>
    %69 = vector.shape_cast %68 : vector<1x4x384xbf16> to vector<4x384xbf16>
    %c9 = arith.constant 9 : index
    %c0_61 = arith.constant 0 : index
    %c0_62 = arith.constant 0 : index
    %70 = vector.load %arg2[%c9, %c0_61, %c0_62] : memref<16x8x4xbf16, #tpu.memory_space<vmem>>, vector<1x8x4xbf16>
    %71 = vector.shape_cast %70 : vector<1x8x4xbf16> to vector<8x4xbf16>
    %cst_63 = arith.constant dense<0.000000e+00> : vector<8x384xf32>
    %72 = tpu.matmul %71, %69, %cst_63 {dimension_numbers = #tpu.dot_dimension_numbers<[1], [0], [0], [1], [0, 0, 1, 1], [], []>} : vector<8x4xbf16>, vector<4x384xbf16>, vector<8x384xf32> -> vector<8x384xf32>
    %73 = arith.addf %67, %72 : vector<8x384xf32>
    %c0_64 = arith.constant 0 : index
    %c0_65 = arith.constant 0 : index
    %c77 = arith.constant 77 : index
    %74 = vector.load %arg1[%c0_64, %c0_65, %c77] : memref<1x4x640xbf16, #tpu.memory_space<vmem>>, vector<1x4x384xbf16>
    %75 = vector.shape_cast %74 : vector<1x4x384xbf16> to vector<4x384xbf16>
    %c10 = arith.constant 10 : index
    %c0_66 = arith.constant 0 : index
    %c0_67 = arith.constant 0 : index
    %76 = vector.load %arg2[%c10, %c0_66, %c0_67] : memref<16x8x4xbf16, #tpu.memory_space<vmem>>, vector<1x8x4xbf16>
    %77 = vector.shape_cast %76 : vector<1x8x4xbf16> to vector<8x4xbf16>
    %cst_68 = arith.constant dense<0.000000e+00> : vector<8x384xf32>
    %78 = tpu.matmul %77, %75, %cst_68 {dimension_numbers = #tpu.dot_dimension_numbers<[1], [0], [0], [1], [0, 0, 1, 1], [], []>} : vector<8x4xbf16>, vector<4x384xbf16>, vector<8x384xf32> -> vector<8x384xf32>
    %79 = arith.addf %73, %78 : vector<8x384xf32>
    %c0_69 = arith.constant 0 : index
    %c0_70 = arith.constant 0 : index
    %c72 = arith.constant 72 : index
    %80 = vector.load %arg1[%c0_69, %c0_70, %c72] : memref<1x4x640xbf16, #tpu.memory_space<vmem>>, vector<1x4x384xbf16>
    %81 = vector.shape_cast %80 : vector<1x4x384xbf16> to vector<4x384xbf16>
    %c11 = arith.constant 11 : index
    %c0_71 = arith.constant 0 : index
    %c0_72 = arith.constant 0 : index
    %82 = vector.load %arg2[%c11, %c0_71, %c0_72] : memref<16x8x4xbf16, #tpu.memory_space<vmem>>, vector<1x8x4xbf16>
    %83 = vector.shape_cast %82 : vector<1x8x4xbf16> to vector<8x4xbf16>
    %cst_73 = arith.constant dense<0.000000e+00> : vector<8x384xf32>
    %84 = tpu.matmul %83, %81, %cst_73 {dimension_numbers = #tpu.dot_dimension_numbers<[1], [0], [0], [1], [0, 0, 1, 1], [], []>} : vector<8x4xbf16>, vector<4x384xbf16>, vector<8x384xf32> -> vector<8x384xf32>
    %85 = arith.addf %79, %84 : vector<8x384xf32>
    %cst_74 = arith.constant 0.000000e+00 : f32
    %86 = vector.broadcast %cst_74 : f32 to vector<8x384xf32>
    %87 = arith.cmpf oge, %85, %86 : vector<8x384xf32>
    %88 = vector.broadcast %0 : f32 to vector<8x384xf32>
    %89 = arith.mulf %88, %85 : vector<8x384xf32>
    %90 = arith.select %87, %85, %89 : vector<8x384xi1>, vector<8x384xf32>
    %c0_75 = arith.constant 0 : index
    %c2_76 = arith.constant 2 : index
    %c0_77 = arith.constant 0 : index
    %c0_78 = arith.constant 0 : index
    %91 = vector.load %arg4[%c0_75, %c2_76, %c0_77, %c0_78] : memref<1x4x8x384xf32, #tpu.memory_space<vmem>>, vector<1x1x8x384xf32>
    %92 = vector.shape_cast %91 : vector<1x1x8x384xf32> to vector<8x384xf32>
    %93 = vector.shape_cast %90 : vector<8x384xf32> to vector<1x1x8x384xf32>
    tpu.vector_store %arg4[%c0_75, %c2_76, %c0_77, %c0_78], %93 {strides = array<i32>} : memref<1x4x8x384xf32, #tpu.memory_space<vmem>>, vector<1x1x8x384xf32>,
    %c0_79 = arith.constant 0 : index
    %c0_80 = arith.constant 0 : index
    %c200 = arith.constant 200 : index
    %94 = vector.load %arg1[%c0_79, %c0_80, %c200] : memref<1x4x640xbf16, #tpu.memory_space<vmem>>, vector<1x4x384xbf16>
    %95 = vector.shape_cast %94 : vector<1x4x384xbf16> to vector<4x384xbf16>
    %c12 = arith.constant 12 : index
    %c0_81 = arith.constant 0 : index
    %c0_82 = arith.constant 0 : index
    %96 = vector.load %arg2[%c12, %c0_81, %c0_82] : memref<16x8x4xbf16, #tpu.memory_space<vmem>>, vector<1x8x4xbf16>
    %97 = vector.shape_cast %96 : vector<1x8x4xbf16> to vector<8x4xbf16>
    %cst_83 = arith.constant dense<0.000000e+00> : vector<8x384xf32>
    %98 = tpu.matmul %97, %95, %cst_83 {dimension_numbers = #tpu.dot_dimension_numbers<[1], [0], [0], [1], [0, 0, 1, 1], [], []>} : vector<8x4xbf16>, vector<4x384xbf16>, vector<8x384xf32> -> vector<8x384xf32>
    %c0_84 = arith.constant 0 : index
    %c0_85 = arith.constant 0 : index
    %c195 = arith.constant 195 : index
    %99 = vector.load %arg1[%c0_84, %c0_85, %c195] : memref<1x4x640xbf16, #tpu.memory_space<vmem>>, vector<1x4x384xbf16>
    %100 = vector.shape_cast %99 : vector<1x4x384xbf16> to vector<4x384xbf16>
    %c13 = arith.constant 13 : index
    %c0_86 = arith.constant 0 : index
    %c0_87 = arith.constant 0 : index
    %101 = vector.load %arg2[%c13, %c0_86, %c0_87] : memref<16x8x4xbf16, #tpu.memory_space<vmem>>, vector<1x8x4xbf16>
    %102 = vector.shape_cast %101 : vector<1x8x4xbf16> to vector<8x4xbf16>
    %cst_88 = arith.constant dense<0.000000e+00> : vector<8x384xf32>
    %103 = tpu.matmul %102, %100, %cst_88 {dimension_numbers = #tpu.dot_dimension_numbers<[1], [0], [0], [1], [0, 0, 1, 1], [], []>} : vector<8x4xbf16>, vector<4x384xbf16>, vector<8x384xf32> -> vector<8x384xf32>
    %104 = arith.addf %98, %103 : vector<8x384xf32>
    %c0_89 = arith.constant 0 : index
    %c0_90 = arith.constant 0 : index
    %c80 = arith.constant 80 : index
    %105 = vector.load %arg1[%c0_89, %c0_90, %c80] : memref<1x4x640xbf16, #tpu.memory_space<vmem>>, vector<1x4x384xbf16>
    %106 = vector.shape_cast %105 : vector<1x4x384xbf16> to vector<4x384xbf16>
    %c14 = arith.constant 14 : index
    %c0_91 = arith.constant 0 : index
    %c0_92 = arith.constant 0 : index
    %107 = vector.load %arg2[%c14, %c0_91, %c0_92] : memref<16x8x4xbf16, #tpu.memory_space<vmem>>, vector<1x8x4xbf16>
    %108 = vector.shape_cast %107 : vector<1x8x4xbf16> to vector<8x4xbf16>
    %cst_93 = arith.constant dense<0.000000e+00> : vector<8x384xf32>
    %109 = tpu.matmul %108, %106, %cst_93 {dimension_numbers = #tpu.dot_dimension_numbers<[1], [0], [0], [1], [0, 0, 1, 1], [], []>} : vector<8x4xbf16>, vector<4x384xbf16>, vector<8x384xf32> -> vector<8x384xf32>
    %110 = arith.addf %104, %109 : vector<8x384xf32>
    %c0_94 = arith.constant 0 : index
    %c0_95 = arith.constant 0 : index
    %c75 = arith.constant 75 : index
    %111 = vector.load %arg1[%c0_94, %c0_95, %c75] : memref<1x4x640xbf16, #tpu.memory_space<vmem>>, vector<1x4x384xbf16>
    %112 = vector.shape_cast %111 : vector<1x4x384xbf16> to vector<4x384xbf16>
    %c15 = arith.constant 15 : index
    %c0_96 = arith.constant 0 : index
    %c0_97 = arith.constant 0 : index
    %113 = vector.load %arg2[%c15, %c0_96, %c0_97] : memref<16x8x4xbf16, #tpu.memory_space<vmem>>, vector<1x8x4xbf16>
    %114 = vector.shape_cast %113 : vector<1x8x4xbf16> to vector<8x4xbf16>
    %cst_98 = arith.constant dense<0.000000e+00> : vector<8x384xf32>
    %115 = tpu.matmul %114, %112, %cst_98 {dimension_numbers = #tpu.dot_dimension_numbers<[1], [0], [0], [1], [0, 0, 1, 1], [], []>} : vector<8x4xbf16>, vector<4x384xbf16>, vector<8x384xf32> -> vector<8x384xf32>
    %116 = arith.addf %110, %115 : vector<8x384xf32>
    %cst_99 = arith.constant 0.000000e+00 : f32
    %117 = vector.broadcast %cst_99 : f32 to vector<8x384xf32>
    %118 = arith.cmpf oge, %116, %117 : vector<8x384xf32>
    %119 = vector.broadcast %0 : f32 to vector<8x384xf32>
    %120 = arith.mulf %119, %116 : vector<8x384xf32>
    %121 = arith.select %118, %116, %120 : vector<8x384xi1>, vector<8x384xf32>
    %c0_100 = arith.constant 0 : index
    %c3_101 = arith.constant 3 : index
    %c0_102 = arith.constant 0 : index
    %c0_103 = arith.constant 0 : index
    %122 = vector.load %arg4[%c0_100, %c3_101, %c0_102, %c0_103] : memref<1x4x8x384xf32, #tpu.memory_space<vmem>>, vector<1x1x8x384xf32>
    %123 = vector.shape_cast %122 : vector<1x1x8x384xf32> to vector<8x384xf32>
    %124 = vector.shape_cast %121 : vector<8x384xf32> to vector<1x1x8x384xf32>
    tpu.vector_store %arg4[%c0_100, %c3_101, %c0_102, %c0_103], %124 {strides = array<i32>} : memref<1x4x8x384xf32, #tpu.memory_space<vmem>>, vector<1x1x8x384xf32>,
    return
  }
  func.func @transform_0(%arg0: i32) -> (i32, i32, i32) {
    %c0_i32 = arith.constant 0 : i32
    %c0_i32_0 = arith.constant 0 : i32
    %c0_i32_1 = arith.constant 0 : i32
    return %arg0, %c0_i32, %c0_i32_0 : i32, i32, i32
  }
  func.func @transform_1(%arg0: i32) -> (i32, i32, i32) {
    %c0_i32 = arith.constant 0 : i32
    %c0_i32_0 = arith.constant 0 : i32
    %c0_i32_1 = arith.constant 0 : i32
    %c0_i32_2 = arith.constant 0 : i32
    return %c0_i32, %c0_i32_0, %c0_i32_1 : i32, i32, i32
  }
  func.func @transform_2(%arg0: i32) -> i32 {
    %c0_i32 = arith.constant 0 : i32
    %c0_i32_0 = arith.constant 0 : i32
    return %c0_i32 : i32
  }
  func.func @transform_3(%arg0: i32) -> (i32, i32, i32, i32) {
    %c0_i32 = arith.constant 0 : i32
    %c0_i32_0 = arith.constant 0 : i32
    %c0_i32_1 = arith.constant 0 : i32
    %c0_i32_2 = arith.constant 0 : i32
    return %arg0, %c0_i32, %c0_i32_0, %c0_i32_1 : i32, i32, i32, i32
  }
}

</mosaic_0001>

<bundles_post_ra>
// kernel: tpu_custom_call.1
= control target key start
LH: loop header
LB: loop body
LE: loop exit
PB: predicated region body
PF: predicated region fallthrough
CT: control target
= control target key end

     0   :  { %s2102_s0 = inlined_call_operand.vmem [shape: bf16[2,4,640], index: 0, kind: input, shape index: {}]   ;;  %s2103_s1 = inlined_call_operand.vmem [shape: bf16[16,8,4], index: 1, kind: input, shape index: {}]   ;;  %s2104_s2 = inlined_call_operand.<no memory space> [shape: f32[1], index: 2, kind: input, shape index: {}]   ;;  %s2105_s3 = inlined_call_operand.hbm [shape: f32[2,4,8,384], index: 3, kind: output, shape index: {}]  }
   0x1   :  { %8 = sst [smem:[#allocation2]] %s2104_s2 }
   0x2   :  { %9 = vsyncpa [#allocation4], 0 }
   0x3   :  { %11 = vsyncpa [#allocation4 + $0x1], 0  ;;  %s1735_s14 = smov 0   ;;  %s1737_s15 = smov 0  }
   0x4   :  { %s1739_s16 = smov 0   ;;  %s1741_s17 = smov 0  }
   0x5 LB: > { %s1756_s2 = sadd.s32 4294967295, %s1695_s17   ;;  %s1496_s18 = sadd.s32 4294967294, %s1695_s17   ;;  %s1695_s17 = sphi %s1741_s17, %s2111_s17   ;;  %s1691_s16 = sphi %s1739_s16, %s2110_s16   ;;  %s1687_s15 = sphi %s1737_s15, %s2109_s15   ;;  %s1683_s14 = sphi %s1735_s14, %s2108_s14  }
   0x6   : > { %s1760_s19 = sadd.s32 1, %s1695_s17   ;;  %s92_s20 = sadd.s32 1, %s1691_s16 }
   0x7   : > { %s89_s21 = ssub.s32 %s1695_s17, %s1760_s19  ;;  %p102_p0 = scmp.ne.s32.totalorder %s1691_s16, %s1687_s15 }
   0x8   : > { %p90_p1 = scmp.eq.s32.totalorder %s89_s21, 0  ;;  %p103_p2 = scmp.eq.s32.totalorder %s1756_s2, 1 }
   0x9   : > { %p108_p3 = scmp.ne.s32.totalorder %s1687_s15, %s1683_s14  ;;  %p109_p4 = scmp.eq.s32.totalorder %s1496_s18, 1 }
   0xa   : > { %s1771_s22 = scalar_select %p90_p1, %s1691_s16, %s92_s20  }
   0xb   : > { %p1773_p5 = por %p103_p2, %p102_p0  ;;  %p1777_p6 = por %p109_p4, %p108_p3 }
   0xc   : > { %p1499_p7 = scmp.ge.s32.totalorder %s1695_s17, 1  ;;  %p141_p8 = scmp.lt.s32.totalorder %s1695_s17, 3 }
   0xe   : > { %p142_p9 = pnand %p1499_p7, %p141_p8 }
   0xf   : > { %p165_p10 = scmp.lt.s32.totalorder (!%p142_p9), %s1756_s2, 1  ;;  %s1697_s30 = smov (!%p142_p9), 8  }
  0x10   : > { %145 = sbr.rel (%p142_p9) target bundleno = 489 (0x1e9), region = 32  ;;  %s1698_s4 = smov (!%p142_p9), 3  }
  0x11   : > { %s1699_s5 = smov (!%p142_p9), 123   ;;  %s1700_s6 = smov (!%p142_p9), 5  }
  0x12   : > { %s1701_s7 = smov (!%p142_p9), 120   ;;  %s1702_s8 = smov (!%p142_p9), 125  }
  0x13   : > { %s1703_s9 = smov (!%p142_p9), 64   ;;  %s1704_s10 = smov (!%p142_p9), 59  }
  0x14   : > { %s1705_s11 = smov (!%p142_p9), 51   ;;  %s1706_s18 = smov (!%p142_p9), 56  }
  0x15   : > { %s166_s25 = scalar_select %p165_p10, %s1756_s2, 1  ;;  %vm194_vm0 = vcmask 64512   ;;  %vm202_vm1 = vcmask 1041408   ;;  %v1501_v54 = vld [vmem:[%s2103_s1 + $0x4] sm:$0xf]  ;;  %vm198_vm2 = vcmask 31744  }
  0x16   : > { %s1707_s20 = smov 61   ;;  %vm268_vm3 = vcmask 23552   ;;  %vm344_vm4 = vcmask 1006592   ;;  %vm498_vm5 = vcmask 39936   ;;  %vm627_vm6 = vcmask 982016  }
  0x17   : > { %s1577_s26 = smul.u32 10, %s166_s25  ;;  %vm706_vm7 = vcmask 1022976   ;;  %vm800_vm8 = vcmask 523264   ;;  %vm872_vm9 = vcmask 482304   ;;  %vm948_vm10 = vcmask 416768  }
  0x18   : > { %vm1027_vm11 = vcmask 457728   ;;  %vm1121_vm12 = vcmask 498688   ;;  %vm1268_vm13 = vcmask 392192   ;;  %vm1347_vm14 = vcmask 433152  }
  0x19   : > { %s1788_s29 = scalar_lea.vmem %s2102_s0, %s1577_s26  ;;  %s1708_s26 = smov 48  }
  0x1a   : > { %v1791_v0 = vld [vmem:[%s1788_s29] sm:$0xff] }
  0x1b   : > { %177 = vst [vmem:[#allocation1] ss:$4 sm:$0xff] %v1791_v0  ;;  %v402_v9 = vld [vmem:[%s1788_s29] sm:$0x3f] }
  0x1c   : > { %v474_v17 = vld [vmem:[%s1788_s29 + $0x2] sm:$0x3f] }
  0x1d   : > { %v777_v29 = vld [vmem:[%s1788_s29 + $0x2] sm:$0xff]  ;;  %s1709_s29 = smov 53  }
  0x22   : > { %v182_v1 = vld.sshfl [vmem:[#allocation1 + $0x10] sm:$0xff pattern:$0x73625140]  ;;  %v178_v2 = vld.sshfl [vmem:[#allocation1] sm:$0xff pattern:$0x73625140] }
  0x23   : > { %190 = vrot.lane.b32.xlu0 %v182_v1, %s1697_s30  ;;  %v180_v3 = vld.sshfl [vmem:[#allocation1 + $0x8] sm:$0xff pattern:$0x73625140]  ;;  %v184_v4 = vld.sshfl [vmem:[#allocation1 + $0x18] sm:$0xff pattern:$0x73625140]  ;;  %186 = vrot.lane.b32.xlu2 %v178_v2, %s1697_s30 }
  0x24   : > { %251 = vst [vmem:[#allocation1] ss:$4 sm:$0xff] %v1791_v0 }
  0x2b   : > { %192 = vrot.lane.b32.xlu0 %v184_v4, %s1697_s30  ;;  %v252_v5 = vld.sshfl [vmem:[#allocation1] sm:$0xff pattern:$0x73625140]  ;;  %v256_v6 = vld.sshfl [vmem:[#allocation1 + $0x10] sm:$0xff pattern:$0x73625140]  ;;  %188 = vrot.lane.b32.xlu2 %v180_v3, %s1697_s30 }
  0x2c   : > { %v258_v7 = vld.sshfl [vmem:[#allocation1 + $0x18] sm:$0xff pattern:$0x73625140]  ;;  %260 = vrot.lane.b32.xlu1 %v252_v5, %s1698_s4  ;;  %v254_v8 = vld.sshfl [vmem:[#allocation1 + $0x8] sm:$0xff pattern:$0x73625140] }
  0x2d   : > { %327 = vst [vmem:[#allocation1] ss:$4 sm:$0xff] %v1791_v0 }
  0x34   : > { %262 = vrot.lane.b32.xlu1 %v254_v8, %s1698_s4  ;;  %v328_v10 = vld.sshfl [vmem:[#allocation1] sm:$0xff pattern:$0x73625140]  ;;  %v334_v11 = vld.sshfl [vmem:[#allocation1 + $0x18] sm:$0xff pattern:$0x73625140] }
  0x35   : > { %336 = vrot.lane.b32.xlu0 %v328_v10, %s1699_s5  ;;  %v330_v12 = vld.sshfl [vmem:[#allocation1 + $0x8] sm:$0xff pattern:$0x73625140]  ;;  %v332_v13 = vld.sshfl [vmem:[#allocation1 + $0x10] sm:$0xff pattern:$0x73625140] }
  0x36   : > { %340 = vrot.lane.b32.xlu2 %v332_v13, %s1699_s5  ;;  %406 = vst [vmem:[#allocation1] ss:$4 sm:$0xff] %v402_v9 }
  0x3c   : > { %338 = vrot.lane.b32.xlu1 %v330_v12, %s1699_s5 }
  0x3d   : > { %264 = vrot.lane.b32.xlu0 %v256_v6, %s1698_s4  ;;  %v1797_v14 = vld.sshfl [vmem:[#allocation1] sm:$0xff pattern:$0x73625140]  ;;  %v1799_v15 = vld.sshfl [vmem:[#allocation1 + $0x8] sm:$0xff pattern:$0x73625140] }
  0x3e   : > { %v1801_v16 = vld.sshfl [vmem:[#allocation1 + $0x10] sm:$0xff pattern:$0x73625140]  ;;  %342 = vrot.lane.b32.xlu2 %v334_v11, %s1699_s5  ;;  %s1653_s5 = scalar_lea.hbm %s2105_s3, 192 }
  0x3f   : > { %481 = vst [vmem:[#allocation1] ss:$4 sm:$0xff] %v1791_v0 }
  0x44   : > { %266 = vrot.lane.b32.xlu1 %v258_v7, %s1698_s4 }
  0x46   : > { %v486_v18 = vld.sshfl [vmem:[#allocation1 + $0x10] sm:$0xff pattern:$0x73625140]  ;;  %v482_v19 = vld.sshfl [vmem:[#allocation1] sm:$0xff pattern:$0x73625140] }
  0x47   : > { %494 = vrot.lane.b32.xlu0 %v486_v18, %s1700_s6  ;;  %v488_v20 = vld.sshfl [vmem:[#allocation1 + $0x18] sm:$0xff pattern:$0x73625140]  ;;  %v484_v21 = vld.sshfl [vmem:[#allocation1 + $0x8] sm:$0xff pattern:$0x73625140]  ;;  %490 = vrot.lane.b32.xlu2 %v482_v19, %s1700_s6 }
  0x48   : > { %554 = vst [vmem:[#allocation1] ss:$4 sm:$0xff] %v474_v17 }
  0x4c   : > { %496 = vrot.lane.b32.xlu1 %v488_v20, %s1700_s6  ;;  %v173_v20 = vld [vmem:[%s2103_s1] sm:$0xf] }
  0x4f   : > { %492 = vrot.lane.b32.xlu0 %v484_v21, %s1700_s6  ;;  %v1805_v22 = vld.sshfl [vmem:[#allocation1] sm:$0xff pattern:$0x73625140]  ;;  %v1807_v23 = vld.sshfl [vmem:[#allocation1 + $0x8] sm:$0xff pattern:$0x73625140] }
  0x50   : > { %v1809_v24 = vld.sshfl [vmem:[#allocation1 + $0x10] sm:$0xff pattern:$0x73625140]  ;;  %s171_s6 = sld [smem:[#allocation2]] }
  0x51   : > { %610 = vst [vmem:[#allocation1] ss:$4 sm:$0xff] %v1791_v0 }
  0x58   : > { %v611_v25 = vld.sshfl [vmem:[#allocation1] sm:$0xff pattern:$0x73625140]  ;;  %v613_v26 = vld.sshfl [vmem:[#allocation1 + $0x8] sm:$0xff pattern:$0x73625140] }
  0x59   : > { %v617_v27 = vld.sshfl [vmem:[#allocation1 + $0x18] sm:$0xff pattern:$0x73625140]  ;;  %619 = vrot.lane.b32.xlu1 %v611_v25, %s1701_s7  ;;  %v615_v28 = vld.sshfl [vmem:[#allocation1 + $0x10] sm:$0xff pattern:$0x73625140]  ;;  %621 = vrot.lane.b32.xlu2 %v613_v26, %s1701_s7 }
  0x5a   : > { %623 = vrot.lane.b32.xlu0 %v615_v28, %s1701_s7  ;;  %689 = vst [vmem:[#allocation1] ss:$4 sm:$0xff] %v1791_v0 }
  0x61   : > { %v692_v30 = vld.sshfl [vmem:[#allocation1 + $0x8] sm:$0xff pattern:$0x73625140]  ;;  %v694_v31 = vld.sshfl [vmem:[#allocation1 + $0x10] sm:$0xff pattern:$0x73625140] }
  0x62   : > { %700 = vrot.lane.b32.xlu1 %v692_v30, %s1702_s8  ;;  %v690_v32 = vld.sshfl [vmem:[#allocation1] sm:$0xff pattern:$0x73625140]  ;;  %v696_v33 = vld.sshfl [vmem:[#allocation1 + $0x18] sm:$0xff pattern:$0x73625140]  ;;  %702 = vrot.lane.b32.xlu2 %v694_v31, %s1702_s8 }
  0x63   : > { %704 = vrot.lane.b32.xlu0 %v696_v33, %s1702_s8  ;;  %783 = vst [vmem:[#allocation1] ss:$4 sm:$0xff] %v777_v29  ;;  %v415_v33 = vsel %vm202_vm1, %v1799_v15, 0 }
  0x6a   : > { %625 = vrot.lane.b32.xlu1 %v617_v27, %s1701_s7  ;;  %v788_v34 = vld.sshfl [vmem:[#allocation1 + $0x10] sm:$0xff pattern:$0x73625140]  ;;  %v784_v35 = vld.sshfl [vmem:[#allocation1] sm:$0xff pattern:$0x73625140]  ;;  %698 = vrot.lane.b32.xlu2 %v690_v32, %s1702_s8 }
  0x6b   : > { %796 = vrot.lane.b32.xlu0 %v788_v34, %s1703_s9  ;;  %v786_v36 = vld.sshfl [vmem:[#allocation1 + $0x8] sm:$0xff pattern:$0x73625140]  ;;  %v790_v37 = vld.sshfl [vmem:[#allocation1 + $0x18] sm:$0xff pattern:$0x73625140] }
  0x6c   : > { %855 = vst [vmem:[#allocation1] ss:$4 sm:$0xff] %v777_v29 }
  0x72   : > { %798 = vrot.lane.b32.xlu1 %v790_v37, %s1703_s9 }
  0x73   : > { %v858_v38 = vld.sshfl [vmem:[#allocation1 + $0x8] sm:$0xff pattern:$0x73625140]  ;;  %v860_v39 = vld.sshfl [vmem:[#allocation1 + $0x10] sm:$0xff pattern:$0x73625140] }
  0x74   : > { %v862_v40 = vld.sshfl [vmem:[#allocation1 + $0x18] sm:$0xff pattern:$0x73625140]  ;;  %866 = vrot.lane.b32.xlu0 %v858_v38, %s1704_s10  ;;  %v856_v41 = vld.sshfl [vmem:[#allocation1] sm:$0xff pattern:$0x73625140] }
  0x75   : > { %931 = vst [vmem:[#allocation1] ss:$4 sm:$0xff] %v1791_v0  ;;  %864 = vrot.lane.b32.xlu2 %v856_v41, %s1704_s10 }
  0x7a   : > { %792 = vrot.lane.b32.xlu1 %v784_v35, %s1703_s9  ;;  %v1508_v35 = vld [vmem:[%s2103_s1 + $0x8] sm:$0xf] }
  0x7c   : > { %v936_v42 = vld.sshfl [vmem:[#allocation1 + $0x10] sm:$0xff pattern:$0x73625140]  ;;  %v938_v43 = vld.sshfl [vmem:[#allocation1 + $0x18] sm:$0xff pattern:$0x73625140] }
  0x7d   : > { %v932_v44 = vld.sshfl [vmem:[#allocation1] sm:$0xff pattern:$0x73625140]  ;;  %v934_v45 = vld.sshfl [vmem:[#allocation1 + $0x8] sm:$0xff pattern:$0x73625140]  ;;  %v187_v46 = vpop.permute.xlu2 %186  ;;  %794 = vrot.lane.b32.xlu2 %v786_v36, %s1703_s9 }
  0x7e   : > { %940 = vrot.lane.b32.xlu0 %v932_v44, %s1705_s11  ;;  %1010 = vst [vmem:[#allocation1] ss:$4 sm:$0xff] %v1791_v0  ;;  %v417_v36 = vsel %vm202_vm1, %v1801_v16, 0  ;;  %v413_v16 = vsel %vm202_vm1, %v1797_v14, 0  ;;  %s162_s9 = sand.u32 1, %s1687_s15  }
  0x7f   : > { %s1419_s27 = scalar_lea.sflag [#allocation4], %s162_s9 }
  0x82   : > { %942 = vrot.lane.b32.xlu1 %v934_v45, %s1705_s11 }
  0x85   : > { %v1013_v47 = vld.sshfl [vmem:[#allocation1 + $0x8] sm:$0xff pattern:$0x73625140]  ;;  %v189_v48 = vpop.permute.xlu2 %188  ;;  %v1017_v49 = vld.sshfl [vmem:[#allocation1 + $0x18] sm:$0xff pattern:$0x73625140]  ;;  %944 = vrot.lane.b32.xlu2 %v936_v42, %s1705_s11 }
  0x86   : > { %868 = vrot.lane.b32.xlu0 %v860_v39, %s1704_s10  ;;  %v1015_v50 = vld.sshfl [vmem:[#allocation1 + $0x10] sm:$0xff pattern:$0x73625140]  ;;  %v195_v51 = vsel %vm194_vm0, %v187_v46, %v189_v48  ;;  %v1011_v52 = vld.sshfl [vmem:[#allocation1] sm:$0xff pattern:$0x73625140] }
  0x87   : > { %v204_v53 = vsel %vm202_vm1, %v195_v51, 0  ;;  %1104 = vst [vmem:[#allocation1] ss:$4 sm:$0xff] %v777_v29 }
  0x88   : > { %219 = vmatpush.bf16.msra.mxu0 %v204_v53  ;;  %v563_v53 = vsel %vm202_vm1, %v1807_v23, 0 }
  0x8a   : > { %870 = vrot.lane.b32.xlu1 %v862_v40, %s1704_s10  ;;  %s1576_s10 = smul.u32 96, %s162_s9 }
  0x8b   : > { %1502 = vmatmul.msk.bf16.vlgmr.msra.gmra.mxu0 %vm198_vm2, %v1501_v54 }
  0x8d   : > { %1021 = vrot.lane.b32.xlu2 %v1013_v47, %s1706_s18  ;;  %v1512_v47 = vld [vmem:[%s2103_s1 + $0xc] sm:$0xf] }
  0x8e   : > { %1023 = vrot.lane.b32.xlu0 %v1015_v50, %s1706_s18  ;;  %v1109_v55 = vld.sshfl [vmem:[#allocation1 + $0x10] sm:$0xff pattern:$0x73625140]  ;;  %v1111_v56 = vld.sshfl [vmem:[#allocation1 + $0x18] sm:$0xff pattern:$0x73625140] }
  0x8f   : > { %v1105_v57 = vld.sshfl [vmem:[#allocation1] sm:$0xff pattern:$0x73625140]  ;;  %v1107_v58 = vld.sshfl [vmem:[#allocation1 + $0x8] sm:$0xff pattern:$0x73625140] }
  0x90   : > { %1176 = vst [vmem:[#allocation1] ss:$4 sm:$0xff] %v777_v29  ;;  %v341_v4 = vpop.permute.xlu2 %340 }
  0x92   : > { %1025 = vrot.lane.b32.xlu1 %v1017_v49, %s1706_s18 }
  0x95   : > { %v191_v59 = vpop.permute.xlu0 %190  ;;  %946 = vrot.lane.b32.xlu2 %v938_v43, %s1705_s11  ;;  %v561_v43 = vsel %vm202_vm1, %v1805_v22, 0  ;;  %s2037_s11 = scalar_lea.vmem [#allocation3], %s1576_s10 }
  0x96   : > { %v196_v60 = vsel %vm194_vm0, %v189_v48, %v191_v59  ;;  %1019 = vrot.lane.b32.xlu0 %v1011_v52, %s1706_s18 }
  0x97   : > { %v207_v61 = vsel %vm202_vm1, %v196_v60, 0  ;;  %v1181_v62 = vld.sshfl [vmem:[#allocation1 + $0x10] sm:$0xff pattern:$0x73625140] }
  0x98   : > { %232 = vmatpush.bf16.msra.mxu1 %v207_v61  ;;  %v1183_v63 = vld.sshfl [vmem:[#allocation1 + $0x18] sm:$0xff pattern:$0x73625140]  ;;  %v1179_v1 = vld.sshfl [vmem:[#allocation1 + $0x8] sm:$0xff pattern:$0x73625140]  ;;  %v343_v18 = vpop.permute.xlu2 %342 }
  0x99   : > { %v1177_v2 = vld.sshfl [vmem:[#allocation1] sm:$0xff pattern:$0x73625140] }
  0x9a   : > { %1117 = vrot.lane.b32.xlu1 %v1109_v55, %s1707_s20  ;;  %1251 = vst [vmem:[#allocation1] ss:$4 sm:$0xff] %v1791_v0 }
  0x9b   : > { %1503 = vmatmul.msk.bf16.vlgmr.msra.gmra.mxu1 %vm198_vm2, %v1501_v54 }
  0x9d   : > { %v193_v3 = vpop.permute.xlu0 %192  ;;  %1119 = vrot.lane.b32.xlu2 %v1111_v56, %s1707_s20 }
  0x9e   : > { %v261_v5 = vpop.permute.xlu1 %260  ;;  %v197_v6 = vsel %vm194_vm0, %v191_v59, %v193_v3  ;;  %1185 = vrot.lane.b32.xlu0 %v1177_v2, %s1706_s18 }
  0x9f   : > { %v210_v7 = vsel %vm202_vm1, %v197_v6, 0  ;;  %v1516_v6 = vld [vmem:[%s2103_s1 + $0x10] sm:$0xf] }
  0xa0   : > { %245 = vmatpush.bf16.msra.mxu2 %v210_v7 }
  0xa1   : > { %v1254_v8 = vld.sshfl [vmem:[#allocation1 + $0x8] sm:$0xff pattern:$0x73625140]  ;;  %v1841_v9 = vld.sshfl [vmem:[#allocation1 + $0x18] sm:$0xff pattern:$0x73625140]  ;;  %v491_v29 = vpop.permute.xlu2 %490 }
  0xa2   : > { %1187 = vrot.lane.b32.xlu1 %v1179_v1, %s1706_s18  ;;  %v1252_v10 = vld.sshfl [vmem:[#allocation1] sm:$0xff pattern:$0x73625140]  ;;  %v1256_v11 = vld.sshfl [vmem:[#allocation1 + $0x10] sm:$0xff pattern:$0x73625140] }
  0xa3   : > { %1504 = vmatmul.msk.bf16.vlgmr.msra.gmra.mxu2 %vm198_vm2, %v1501_v54  ;;  %1330 = vst [vmem:[#allocation1] ss:$4 sm:$0xff] %v1791_v0  ;;  %v347_v0 = vsel %vm344_vm4, %v341_v4, %v343_v18  ;;  %v565_v54 = vsel %vm202_vm1, %v1809_v24, 0  ;;  %v1517_v24 = vld [vmem:[%s2103_s1 + $0x14] sm:$0xf] }
  0xa4   : > { %v358_v26 = vsel %vm202_vm1, %v347_v0, 0 }
  0xa5   : > { %1113 = vrot.lane.b32.xlu2 %v1105_v57, %s1707_s20 }
  0xa6   : > { %v263_v12 = vpop.permute.xlu1 %262  ;;  %1115 = vrot.lane.b32.xlu0 %v1107_v58, %s1707_s20 }
  0xa7   : > { %v337_v13 = vpop.permute.xlu0 %336  ;;  %v269_v17 = vsel %vm268_vm3, %v261_v5, %v263_v12 }
  0xa8   : > { %v276_v19 = vsel %vm202_vm1, %v269_v17, 0  ;;  %v1524_v17 = vld [vmem:[%s2103_s1 + $0x18] sm:$0xf] }
  0xa9   : > { %291 = vmatpush.bf16.msra.mxu3 %v276_v19 }
  0xaa   : > { %1260 = vrot.lane.b32.xlu1 %v1252_v10, %s1708_s26  ;;  %v1333_v37 = vld.sshfl [vmem:[#allocation1 + $0x8] sm:$0xff pattern:$0x73625140]  ;;  %v1335_v39 = vld.sshfl [vmem:[#allocation1 + $0x10] sm:$0xff pattern:$0x73625140] }
  0xab   : > { %v1331_v45 = vld.sshfl [vmem:[#allocation1] sm:$0xff pattern:$0x73625140]  ;;  %v1337_v2 = vld.sshfl [vmem:[#allocation1 + $0x18] sm:$0xff pattern:$0x73625140] }
  0xac   : > { %1505 = vmatmul.msk.bf16.vlgmr.msra.gmra.mxu3 %vm198_vm2, %v173_v20 }
  0xad   : > { %1262 = vrot.lane.b32.xlu2 %v1254_v8, %s1708_s26 }
  0xae   : > { %v339_v21 = vpop.permute.xlu1 %338  ;;  %1264 = vrot.lane.b32.xlu0 %v1256_v11, %s1708_s26 }
  0xaf   : > { %v265_v25 = vpop.permute.xlu0 %264  ;;  %v345_v27 = vsel %vm344_vm4, %v337_v13, %v339_v21  ;;  %v346_v28 = vsel %vm344_vm4, %v339_v21, %v341_v4 }
  0xb0   : > { %v270_v30 = vsel %vm268_vm3, %v263_v12, %v265_v25  ;;  %v352_v31 = vsel %vm202_vm1, %v345_v27, 0  ;;  %v355_v32 = vsel %vm202_vm1, %v346_v28, 0 }
  0xb1   : > { %v279_v34 = vsel %vm202_vm1, %v270_v30, 0  ;;  %367 = vmatpush.bf16.msrb.mxu2 %v352_v31  ;;  %380 = vmatpush.bf16.msrb.mxu3 %v355_v32 }
  0xb2   : > { %304 = vmatpush.bf16.msrb.mxu0 %v279_v34  ;;  %1189 = vrot.lane.b32.xlu1 %v1181_v62, %s1706_s18 }
  0xb3   : > { %v622_v40 = vpop.permute.xlu2 %621 }
  0xb4   : > { %1509 = vmatmul.msk.bf16.vlgmr.msrb.gmra.mxu2 %vm198_vm2, %v1508_v35 }
  0xb5   : > { %439 = vmatpush.bf16.msra.mxu2 %v415_v33  ;;  %452 = vmatpush.bf16.msra.mxu3 %v417_v36  ;;  %v1528_v33 = vld [vmem:[%s2103_s1 + $0x1c] sm:$0xf] }
  0xb6   : > { %393 = vmatpush.bf16.msra.mxu0 %v358_v26  ;;  %1191 = vrot.lane.b32.xlu2 %v1183_v63, %s1706_s18  ;;  %v267_v15 = vpop.permute.xlu1 %266  ;;  %s1578_s18 = smul.u32 96, %s1756_s2  ;;  %s1431_s2 = sshll.u32 %s2037_s11, 4  ;;  %s1432_s2 = int_to_ptr.vmem [resolvable:$true] %s1431_s2 }
  0xb7   : > { %1506 = vmatmul.msk.bf16.vlgmr.msrb.gmra.mxu0 %vm198_vm2, %v173_v20  ;;  %1341 = vrot.lane.b32.xlu0 %v1333_v37, %s1709_s29  ;;  %v271_v38 = vsel %vm268_vm3, %v265_v25, %v267_v15 }
  0xb8   : > { %v282_v41 = vsel %vm202_vm1, %v271_v38, 0  ;;  %s1430_s25 = scalar_lea.hbm %s2105_s3, %s1578_s18 }
  0xb9   : > { %317 = vmatpush.bf16.msrb.mxu1 %v282_v41  ;;  %v495_v42 = vpop.permute.xlu0 %494 }
  0xba   : > { %1343 = vrot.lane.b32.xlu1 %v1335_v39, %s1709_s29 }
  0xbc   : > { %1507 = vmatmul.msk.bf16.vlgmr.msrb.gmra.mxu1 %vm198_vm2, %v173_v20  ;;  %1510 = vmatmul.msk.bf16.vlgmr.msrb.gmra.mxu3 %vm198_vm2, %v1508_v35  ;;  %v703_v22 = vpop.permute.xlu2 %702 }
  0xbd   : > { %426 = vmatpush.bf16.msra.mxu1 %v413_v16  ;;  %574 = vmatpush.bf16.msrb.mxu3 %v561_v43 }
  0xbe   : > { %v497_v44 = vpop.permute.xlu1 %496  ;;  %1345 = vrot.lane.b32.xlu2 %v1337_v2, %s1709_s29 }
  0xbf   : > { %1266 = vrot.lane.b32.xlu0 %v1841_v9, %s1708_s26  ;;  %v501_v14 = vsel %vm498_vm5, %v495_v42, %v497_v44  ;;  %s1433_s26 = sshll.u32 %s1430_s25, 4  ;;  %s1434_s26 = int_to_ptr.hbm [resolvable:$true] %s1433_s26 }
  0xc0   : > { %v512_v46 = vsel %vm202_vm1, %v501_v14, 0  ;;  %s1647_s28 = sshra.s32 %s1434_s26, 4  ;;  %s1648_s28 = int_to_ptr.hbm [resolvable:$true] %s1647_s28 }
  0xc1   : > { %v493_v48 = vpop.permute.xlu0 %492  ;;  %547 = vmatpush.bf16.msrb.mxu2 %v512_v46  ;;  %v1536_v46 = vld [vmem:[%s2103_s1 + $0x24] sm:$0xf]  ;;  %p1654_p0 = scmp.lt.s32.totalorder %s1648_s28, %s2105_s3 }
  0xc2   : > { %v500_v49 = vsel %vm498_vm5, %v493_v48, %v495_v42  ;;  %v499_v50 = vsel %vm498_vm5, %v491_v29, %v493_v48  ;;  %1339 = vrot.lane.b32.xlu1 %v1331_v45, %s1709_s29  ;;  %s1649_s29 = scalar_lea.hbm %s1648_s28, 96 }
  0xc3   : > { %v509_v51 = vsel %vm202_vm1, %v500_v49, 0  ;;  %v506_v52 = vsel %vm202_vm1, %v499_v50, 0  ;;  %p1650_p11 = scmp.ne.s32.totalorder %s1648_s28, %s1649_s29  ;;  %p1655_p1 = scmp.lt.s32.totalorder %s1653_s5, %s1649_s29 }
  0xc4   : > { %1514 = vmatmul.msk.bf16.vlgmr.msra.gmra.mxu2 %vm198_vm2, %v1512_v47  ;;  %534 = vmatpush.bf16.msrb.mxu1 %v509_v51  ;;  %v699_v56 = vpop.permute.xlu2 %698 }
  0xc5   : > { %521 = vmatpush.bf16.msrb.mxu0 %v506_v52  ;;  %p1651_p12 = pnand %p1650_p11, %p1773_p5  ;;  %p1656_p2 = por %p1655_p1, %p1654_p0 }
  0xc7   : > { %1511 = vmatmul.msk.bf16.vlgmr.msra.gmra.mxu0 %vm198_vm2, %v1508_v35  ;;  %p1652_p13 = pneg %p1651_p12 }
  0xc9   : > { %587 = vmatpush.bf16.msra.mxu0 %v563_v53  ;;  %v1535_v53 = vld [vmem:[%s2103_s1 + $0x20] sm:$0xf]  ;;  %p1657_p3 = pnand %p1656_p2, %p1652_p13 }
  0xcb   : > { %v620_v55 = vpop.permute.xlu1 %619 }
  0xcc   : > { %1515 = vmatmul.msk.bf16.vlgmr.msra.gmra.mxu3 %vm198_vm2, %v1512_v47  ;;  %1513 = vmatmul.msk.bf16.vlgmr.msra.gmra.mxu1 %vm198_vm2, %v1512_v47  ;;  %v624_v57 = vpop.permute.xlu0 %623  ;;  %v628_v58 = vsel %vm627_vm6, %v620_v55, %v622_v40 }
  0xcd   : > { %v629_v59 = vsel %vm627_vm6, %v622_v40, %v624_v57  ;;  %v635_v23 = vsel %vm202_vm1, %v628_v58, 0  ;;  %600 = vmatpush.bf16.msra.mxu1 %v565_v54 }
  0xce   : > { %v638_v60 = vsel %vm202_vm1, %v629_v59, 0  ;;  %650 = vmatpush.bf16.msra.mxu2 %v635_v23 }
  0xcf   : > { %663 = vmatpush.bf16.msra.mxu3 %v638_v60  ;;  %v865_v1 = vpop.permute.xlu2 %864 }
  0xd4   : > { %1520 = vmatmul.msk.bf16.vlgmr.msrb.gmra.mxu2 %vm198_vm2, %v1517_v24  ;;  %v701_v61 = vpop.permute.xlu1 %700 }
  0xd5   : > { %v705_v62 = vpop.permute.xlu0 %704  ;;  %v708_v63 = vsel %vm706_vm7, %v701_v61, %v703_v22  ;;  %v707_v5 = vsel %vm706_vm7, %v699_v56, %v701_v61 }
  0xd6   : > { %v717_v3 = vsel %vm202_vm1, %v708_v63, 0  ;;  %v709_v4 = vsel %vm706_vm7, %v703_v22, %v705_v62  ;;  %v714_v8 = vsel %vm202_vm1, %v707_v5, 0 }
  0xd7   : > { %1518 = vmatmul.msk.bf16.vlgmr.msrb.gmra.mxu0 %vm198_vm2, %v1517_v24  ;;  %742 = vmatpush.bf16.msrb.mxu2 %v717_v3  ;;  %v720_v7 = vsel %vm202_vm1, %v709_v4, 0  ;;  %v795_v13 = vpop.permute.xlu2 %794 }
  0xdc   : > { %1519 = vmatmul.msk.bf16.vlgmr.msrb.gmra.mxu1 %vm198_vm2, %v1517_v24  ;;  %1521 = vmatmul.msk.bf16.vlgmr.msrb.gmra.mxu3 %vm198_vm2, %v1516_v6  ;;  %v626_v9 = vpop.permute.xlu1 %625  ;;  %v1543_v24 = vld [vmem:[%s2103_s1 + $0x28] sm:$0xf] }
  0xdd   : > { %v630_v10 = vsel %vm627_vm6, %v624_v57, %v626_v9  ;;  %v797_v11 = vpop.permute.xlu0 %796  ;;  %729 = vmatpush.bf16.msrb.mxu1 %v714_v8  ;;  %755 = vmatpush.bf16.msrb.mxu3 %v720_v7 }
  0xde   : > { %v641_v12 = vsel %vm202_vm1, %v630_v10, 0  ;;  %v802_v25 = vsel %vm800_vm8, %v795_v13, %v797_v11 }
  0xdf   : > { %676 = vmatpush.bf16.msrb.mxu0 %v641_v12  ;;  %v945_v26 = vpop.permute.xlu2 %944  ;;  %v811_v28 = vsel %vm202_vm1, %v802_v25, 0 }
  0xe4   : > { %1525 = vmatmul.msk.bf16.vlgmr.msra.gmra.mxu2 %vm198_vm2, %v1524_v17  ;;  %v799_v18 = vpop.permute.xlu1 %798 }
  0xe5   : > { %v803_v19 = vsel %vm800_vm8, %v797_v11, %v799_v18 }
  0xe6   : > { %v814_v20 = vsel %vm202_vm1, %v803_v19, 0  ;;  %v867_v0 = vpop.permute.xlu0 %866 }
  0xe7   : > { %1522 = vmatmul.msk.bf16.vlgmr.msra.gmra.mxu0 %vm198_vm2, %v1516_v6  ;;  %v873_v21 = vsel %vm872_vm9, %v865_v1, %v867_v0  ;;  %849 = vmatpush.bf16.msra.mxu2 %v814_v20  ;;  %v1022_v34 = vpop.permute.xlu2 %1021 }
  0xe8   : > { %v880_v27 = vsel %vm202_vm1, %v873_v21, 0 }
  0xec   : > { %1523 = vmatmul.msk.bf16.vlgmr.msra.gmra.mxu1 %vm198_vm2, %v1516_v6  ;;  %1526 = vmatmul.msk.bf16.vlgmr.msra.gmra.mxu3 %vm198_vm2, %v1524_v17  ;;  %v793_v29 = vpop.permute.xlu1 %792 }
  0xed   : > { %v801_v30 = vsel %vm800_vm8, %v793_v29, %v795_v13  ;;  %836 = vmatpush.bf16.msra.mxu1 %v811_v28  ;;  %895 = vmatpush.bf16.msra.mxu3 %v880_v27 }
  0xee   : > { %v808_v31 = vsel %vm202_vm1, %v801_v30, 0 }
  0xef   : > { %823 = vmatpush.bf16.msra.mxu0 %v808_v31  ;;  %v947_v43 = vpop.permute.xlu2 %946 }
  0xf0   : > { %v941_v32 = vpop.permute.xlu0 %940  ;;  %v951_v45 = vsel %vm948_vm10, %v945_v26, %v947_v43 }
  0xf1   : > { %v962_v22 = vsel %vm202_vm1, %v951_v45, 0  ;;  %v1554_v45 = vld [vmem:[%s2103_s1 + $0x30] sm:$0xf] }
  0xf4   : > { %1530 = vmatmul.msk.bf16.vlgmr.msrb.gmra.mxu2 %vm198_vm2, %v1528_v33  ;;  %v943_v35 = vpop.permute.xlu1 %942 }
  0xf5   : > { %v949_v36 = vsel %vm948_vm10, %v941_v32, %v943_v35  ;;  %v950_v15 = vsel %vm948_vm10, %v943_v35, %v945_v26 }
  0xf6   : > { %v956_v37 = vsel %vm202_vm1, %v949_v36, 0  ;;  %v959_v39 = vsel %vm202_vm1, %v950_v15, 0  ;;  %v1555_v36 = vld [vmem:[%s2103_s1 + $0x34] sm:$0xf] }
  0xf7   : > { %1527 = vmatmul.msk.bf16.vlgmr.msrb.gmra.mxu0 %vm198_vm2, %v1524_v17  ;;  %971 = vmatpush.bf16.msrb.mxu2 %v956_v37  ;;  %v1120_v57 = vpop.permute.xlu2 %1119  ;;  %v1547_v17 = vld [vmem:[%s2103_s1 + $0x2c] sm:$0xf] }
  0xf8   : > { %v869_v38 = vpop.permute.xlu0 %868 }
  0xf9   : > { %v874_v16 = vsel %vm872_vm9, %v867_v0, %v869_v38 }
  0xfa   : > { %v883_v40 = vsel %vm202_vm1, %v874_v16, 0 }
  0xfb   : > { %908 = vmatpush.bf16.msrb.mxu0 %v883_v40 }
  0xfc   : > { %1529 = vmatmul.msk.bf16.vlgmr.msrb.gmra.mxu1 %vm198_vm2, %v1528_v33  ;;  %1531 = vmatmul.msk.bf16.vlgmr.msrb.gmra.mxu3 %vm198_vm2, %v1528_v33  ;;  %v871_v41 = vpop.permute.xlu1 %870 }
  0xfd   : > { %v875_v42 = vsel %vm872_vm9, %v869_v38, %v871_v41  ;;  %984 = vmatpush.bf16.msrb.mxu3 %v959_v39 }
  0xfe   : > { %v886_v44 = vsel %vm202_vm1, %v875_v42, 0 }
  0xff   : > { %921 = vmatpush.bf16.msrb.mxu1 %v886_v44  ;;  %v1114_v63 = vpop.permute.xlu2 %1113 }
 0x100   : > { %v1024_v14 = vpop.permute.xlu0 %1023 }
 0x101   : > { %v1029_v47 = vsel %vm1027_vm11, %v1022_v34, %v1024_v14 }
 0x102   : > { %v1038_v48 = vsel %vm202_vm1, %v1029_v47, 0 }
 0x104   : > { %1539 = vmatmul.msk.bf16.vlgmr.msra.gmra.mxu2 %vm198_vm2, %v1536_v46  ;;  %v1026_v49 = vpop.permute.xlu1 %1025 }
 0x105   : > { %1063 = vmatpush.bf16.msra.mxu2 %v1038_v48  ;;  %v1030_v50 = vsel %vm1027_vm11, %v1024_v14, %v1026_v49 }
 0x106   : > { %v1041_v55 = vsel %vm202_vm1, %v1030_v50, 0 }
 0x107   : > { %1537 = vmatmul.msk.bf16.vlgmr.msra.gmra.mxu0 %vm198_vm2, %v1536_v46  ;;  %v1263_v10 = vpop.permute.xlu2 %1262 }
 0x108   : > { %997 = vmatpush.bf16.msra.mxu0 %v962_v22  ;;  %v1020_v51 = vpop.permute.xlu0 %1019  ;;  %v1958_v52 = vpop.f32.mrf.mxu0 }
 0x109   : > { %v1028_v54 = vsel %vm1027_vm11, %v1020_v51, %v1022_v34  ;;  %v1562_v51 = vld [vmem:[%s2103_s1 + $0x38] sm:$0xf] }
 0x10a   : > { %v1035_v56 = vsel %vm202_vm1, %v1028_v54, 0 }
 0x10c   : > { %1538 = vmatmul.msk.bf16.vlgmr.msra.gmra.mxu1 %vm198_vm2, %v1536_v46  ;;  %1540 = vmatmul.msk.bf16.vlgmr.msra.gmra.mxu3 %vm198_vm2, %v1535_v53  ;;  %v1118_v58 = vpop.permute.xlu1 %1117 }
 0x10d   : > { %1050 = vmatpush.bf16.msra.mxu1 %v1035_v56  ;;  %1076 = vmatpush.bf16.msra.mxu3 %v1041_v55  ;;  %v1124_v59 = vsel %vm1121_vm12, %v1118_v58, %v1120_v57 }
 0x10e   : > { %v1135_v61 = vsel %vm202_vm1, %v1124_v59, 0  ;;  %v2030_v59 = vstv %s171_s6 }
 0x110   : > { %v1186_v23 = vpop.permute.xlu0 %1185  ;;  %v223_v60 = vpop.f32.mrf.mxu0 }
 0x111   : > { %v1192_v0 = vpop.permute.xlu2 %1191 }
 0x114   : > { %1544 = vmatmul.msk.bf16.vlgmr.msrb.gmra.mxu2 %vm198_vm2, %v1543_v24  ;;  %v1188_v62 = vpop.permute.xlu1 %1187 }
 0x115   : > { %1170 = vmatpush.bf16.msrb.mxu2 %v1135_v61  ;;  %v1193_v1 = vsel %vm1027_vm11, %v1186_v23, %v1188_v62 }
 0x116   : > { %v1200_v6 = vsel %vm202_vm1, %v1193_v1, 0 }
 0x117   : > { %1541 = vmatmul.msk.bf16.vlgmr.msrb.gmra.mxu0 %vm198_vm2, %v1535_v53 }
 0x118   : > { %v1116_v2 = vpop.permute.xlu0 %1115  ;;  %v1976_v3 = vpop.f32.mrf.mxu1 }
 0x119   : > { %v1123_v4 = vsel %vm1121_vm12, %v1116_v2, %v1118_v58  ;;  %v1122_v5 = vsel %vm1121_vm12, %v1114_v63, %v1116_v2  ;;  %v1346_v40 = vpop.permute.xlu2 %1345 }
 0x11a   : > { %v1132_v7 = vsel %vm202_vm1, %v1123_v4, 0  ;;  %v1129_v8 = vsel %vm202_vm1, %v1122_v5, 0 }
 0x11b   : > { %1144 = vmatpush.bf16.msrb.mxu0 %v1129_v8 }
 0x11c   : > { %1542 = vmatmul.msk.bf16.vlgmr.msrb.gmra.mxu1 %vm198_vm2, %v1535_v53  ;;  %1545 = vmatmul.msk.bf16.vlgmr.msrb.gmra.mxu3 %vm198_vm2, %v1543_v24  ;;  %v1261_v9 = vpop.permute.xlu1 %1260 }
 0x11d   : > { %1157 = vmatpush.bf16.msrb.mxu1 %v1132_v7  ;;  %1215 = vmatpush.bf16.msrb.mxu3 %v1200_v6  ;;  %v1269_v11 = vsel %vm1268_vm13, %v1261_v9, %v1263_v10  ;;  %v1566_v9 = vld [vmem:[%s2103_s1 + $0x3c] sm:$0xf] }
 0x11e   : > { %v1276_v18 = vsel %vm202_vm1, %v1269_v11, 0 }
 0x120   : > { %v1265_v12 = vpop.permute.xlu0 %1264  ;;  %v236_v13 = vpop.f32.mrf.mxu1 }
 0x121   : > { %v1270_v26 = vsel %vm1268_vm13, %v1263_v10, %v1265_v12 }
 0x122   : > { %v1279_v29 = vsel %vm202_vm1, %v1270_v26, 0 }
 0x124   : > { %1549 = vmatmul.msk.bf16.vlgmr.msra.gmra.mxu2 %vm198_vm2, %v1547_v17  ;;  %v1190_v19 = vpop.permute.xlu1 %1189 }
 0x125   : > { %v1194_v20 = vsel %vm1027_vm11, %v1188_v62, %v1190_v19  ;;  %1291 = vmatpush.bf16.msra.mxu2 %v1276_v18  ;;  %v1195_v27 = vsel %vm1027_vm11, %v1190_v19, %v1192_v0 }
 0x126   : > { %v1993_v21 = vpop.f32.mrf.mxu2  ;;  %v1203_v25 = vsel %vm202_vm1, %v1194_v20, 0  ;;  %v1206_v30 = vsel %vm202_vm1, %v1195_v27, 0 }
 0x127   : > { %1546 = vmatmul.msk.bf16.vlgmr.msra.gmra.mxu0 %vm198_vm2, %v1543_v24 }
 0x128   : > { %1228 = vmatpush.bf16.msra.mxu0 %v1203_v25 }
 0x129   : > { %v1342_v28 = vpop.permute.xlu0 %1341 }
 0x12c   : > { %1548 = vmatmul.msk.bf16.vlgmr.msra.gmra.mxu1 %vm198_vm2, %v1547_v17  ;;  %1550 = vmatmul.msk.bf16.vlgmr.msra.gmra.mxu3 %vm198_vm2, %v1547_v17  ;;  %v1344_v31 = vpop.permute.xlu1 %1343 }
 0x12d   : > { %1304 = vmatpush.bf16.msra.mxu3 %v1279_v29  ;;  %1241 = vmatpush.bf16.msra.mxu1 %v1206_v30  ;;  %v1349_v34 = vsel %vm1347_vm14, %v1342_v28, %v1344_v31  ;;  %v1350_v44 = vsel %vm1347_vm14, %v1344_v31, %v1346_v40 }
 0x12e   : > { %v249_v32 = vpop.f32.mrf.mxu2  ;;  %v1358_v38 = vsel %vm202_vm1, %v1349_v34, 0  ;;  %v1361_v48 = vsel %vm202_vm1, %v1350_v44, 0 }
 0x12f   : > { %v293_v33 = vpop.f32.mrf.mxu3 }
 0x130   : > { %v294_v55 = vadd.f32 %v293_v33, %v1958_v52 }
 0x131   : > { %v1267_v35 = vpop.permute.xlu0 %1266 }
 0x132   : > { %v1271_v37 = vsel %vm1268_vm13, %v1265_v12, %v1267_v35 }
 0x133   : > { %v1282_v16 = vsel %vm202_vm1, %v1271_v37, 0 }
 0x134   : > { %v306_v15 = vpop.f32.mrf.mxu0  ;;  %1558 = vmatmul.msk.bf16.vlgmr.msrb.gmra.mxu2 %vm198_vm2, %v1555_v36  ;;  %v1340_v39 = vpop.permute.xlu1 %1339 }
 0x135   : > { %1383 = vmatpush.bf16.msrb.mxu2 %v1358_v38  ;;  %v1348_v43 = vsel %vm1347_vm14, %v1340_v39, %v1342_v28  ;;  %v307_v54 = vadd.f32 %v306_v15, %v1976_v3 }
 0x136   : > { %v1355_v47 = vsel %vm202_vm1, %v1348_v43, 0 }
 0x137   : > { %1556 = vmatmul.msk.bf16.vlgmr.msrb.gmra.mxu0 %vm198_vm2, %v1555_v36  ;;  %v295_v41 = vpop.f32.mrf.mxu3  ;;  %v369_v42 = vpop.f32.mrf.mxu2 }
 0x138   : > { %1317 = vmatpush.bf16.msrb.mxu0 %v1282_v16  ;;  %v399_v23 = vadd.f32 %v369_v42, %v294_v55 }
 0x139   : > { %v319_v14 = vpop.f32.mrf.mxu1 }
 0x13a   : > { %v320_v1 = vadd.f32 %v319_v14, %v1993_v21 }
 0x13c   : > { %v308_v46 = vpop.f32.mrf.mxu0  ;;  %1557 = vmatmul.msk.bf16.vlgmr.msrb.gmra.mxu1 %vm198_vm2, %v1555_v36  ;;  %1559 = vmatmul.msk.bf16.vlgmr.msrb.gmra.mxu3 %vm198_vm2, %v1554_v45 }
 0x13d   : > { %1370 = vmatpush.bf16.msrb.mxu1 %v1355_v47  ;;  %1396 = vmatpush.bf16.msrb.mxu3 %v1361_v48 }
 0x13f   : > { %v371_v22 = vpop.f32.mrf.mxu2  ;;  %v382_v49 = vpop.f32.mrf.mxu3 }
 0x140   : > { %v400_v56 = vadd.f32 %v382_v49, %v307_v54 }
 0x141   : > { %v321_v50 = vpop.f32.mrf.mxu1 }
 0x144   : > { %v395_v53 = vpop.f32.mrf.mxu0  ;;  %1563 = vmatmul.msk.bf16.vlgmr.msra.gmra.mxu2 %vm198_vm2, %v1562_v51 }
 0x145   : > { %v401_v3 = vadd.f32 %v395_v53, %v320_v1 }
 0x147   : > { %1560 = vmatmul.msk.bf16.vlgmr.msra.gmra.mxu0 %vm198_vm2, %v1554_v45  ;;  %v384_v57 = vpop.f32.mrf.mxu3  ;;  %v441_v58 = vpop.f32.mrf.mxu2 }
 0x148   : > { %v459_v60 = vadd.f32 %v441_v58, %v400_v56 }
 0x149   : > { %v428_v24 = vpop.f32.mrf.mxu1 }
 0x14a   : > { %vm462_vm15 = vcmp.ge.f32.partialorder %v459_v60, 0.0  ;;  %v466_v61 = vmul.f32 %v2030_v59, %v459_v60  ;;  %v458_v63 = vadd.f32 %v428_v24, %v399_v23 }
 0x14c   : > { %v397_v62 = vpop.f32.mrf.mxu0  ;;  %v469_v2 = vsel %vm462_vm15, %v459_v60, %v466_v61  ;;  %vm461_vm0 = vcmp.ge.f32.partialorder %v458_v63, 0.0  ;;  %v465_v52 = vmul.f32 %v2030_v59, %v458_v63  ;;  %1561 = vmatmul.msk.bf16.vlgmr.msra.gmra.mxu1 %vm198_vm2, %v1554_v45  ;;  %1564 = vmatmul.msk.bf16.vlgmr.msra.gmra.mxu3 %vm198_vm2, %v1562_v51 }
 0x14d   : > { %472 = vst [vmem:[%s2037_s11 + $0x8] sm:$0xff] %v469_v2 }
 0x14e   : > { %v468_v4 = vsel %vm461_vm0, %v458_v63, %v465_v52 }
 0x14f   : > { %471 = vst [vmem:[%s2037_s11] sm:$0xff] %v468_v4  ;;  %v443_v5 = vpop.f32.mrf.mxu2  ;;  %v454_v6 = vpop.f32.mrf.mxu3 }
 0x150   : > { %v460_v7 = vadd.f32 %v454_v6, %v401_v3 }
 0x151   : > { %v430_v8 = vpop.f32.mrf.mxu1 }
 0x152   : > { %vm463_vm1 = vcmp.ge.f32.partialorder %v460_v7, 0.0  ;;  %v467_v10 = vmul.f32 %v2030_v59, %v460_v7 }
 0x154   : > { %v523_v11 = vpop.f32.mrf.mxu0  ;;  %v470_v12 = vsel %vm463_vm1, %v460_v7, %v467_v10  ;;  %1568 = vmatmul.msk.bf16.vlgmr.msrb.gmra.mxu2 %vm198_vm2, %v1566_v9 }
 0x155   : > { %473 = vst [vmem:[%s2037_s11 + $0x10] sm:$0xff] %v470_v12 }
 0x157   : > { %1565 = vmatmul.msk.bf16.vlgmr.msrb.gmra.mxu0 %vm198_vm2, %v1562_v51  ;;  %v456_v13 = vpop.f32.mrf.mxu3  ;;  %v549_v17 = vpop.f32.mrf.mxu2 }
 0x159   : > { %v536_v18 = vpop.f32.mrf.mxu1 }
 0x15c   : > { %v525_v19 = vpop.f32.mrf.mxu0  ;;  %1567 = vmatmul.msk.bf16.vlgmr.msrb.gmra.mxu1 %vm198_vm2, %v1566_v9  ;;  %1569 = vmatmul.msk.bf16.vlgmr.msrb.gmra.mxu3 %vm198_vm2, %v1566_v9 }
 0x15f   : > { %v551_v20 = vpop.f32.mrf.mxu2  ;;  %v576_v0 = vpop.f32.mrf.mxu3 }
 0x160   : > { %v577_v35 = vadd.f32 %v576_v0, %v523_v11 }
 0x161   : > { %v538_v21 = vpop.f32.mrf.mxu1 }
 0x164   : > { %v589_v25 = vpop.f32.mrf.mxu0 }
 0x165   : > { %v590_v34 = vadd.f32 %v589_v25, %v536_v18 }
 0x167   : > { %v578_v26 = vpop.f32.mrf.mxu3  ;;  %v652_v27 = vpop.f32.mrf.mxu2 }
 0x168   : > { %v682_v38 = vadd.f32 %v652_v27, %v577_v35 }
 0x169   : > { %v602_v28 = vpop.f32.mrf.mxu1 }
 0x16a   : > { %v603_v43 = vadd.f32 %v602_v28, %v549_v17 }
 0x16c   : > { %v591_v29 = vpop.f32.mrf.mxu0 }
 0x16f   : > { %v654_v30 = vpop.f32.mrf.mxu2  ;;  %v665_v31 = vpop.f32.mrf.mxu3 }
 0x170   : > { %v683_v36 = vadd.f32 %v665_v31, %v590_v34 }
 0x171   : > { %v604_v32 = vpop.f32.mrf.mxu1 }
 0x174   : > { %v678_v33 = vpop.f32.mrf.mxu0 }
 0x175   : > { %v684_v45 = vadd.f32 %v678_v33, %v603_v43 }
 0x177   : > { %v667_v37 = vpop.f32.mrf.mxu3  ;;  %v744_v15 = vpop.f32.mrf.mxu2 }
 0x178   : > { %v762_v16 = vadd.f32 %v744_v15, %v683_v36 }
 0x179   : > { %v731_v39 = vpop.f32.mrf.mxu1 }
 0x17a   : > { %vm765_vm2 = vcmp.ge.f32.partialorder %v762_v16, 0.0  ;;  %v768_v40 = vmul.f32 %v762_v16, %v2030_v59  ;;  %v761_v42 = vadd.f32 %v731_v39, %v682_v38 }
 0x17c   : > { %v680_v41 = vpop.f32.mrf.mxu0  ;;  %v771_v44 = vsel %vm765_vm2, %v762_v16, %v768_v40  ;;  %vm764_vm3 = vcmp.ge.f32.partialorder %v761_v42, 0.0  ;;  %v767_v14 = vmul.f32 %v761_v42, %v2030_v59 }
 0x17d   : > { %1533 = vst [vmem:[%s2037_s11 + $0x20] sm:$0xff] %v771_v44 }
 0x17e   : > { %v770_v46 = vsel %vm764_vm3, %v761_v42, %v767_v14 }
 0x17f   : > { %1532 = vst [vmem:[%s2037_s11 + $0x18] sm:$0xff] %v770_v46  ;;  %v746_v47 = vpop.f32.mrf.mxu2  ;;  %v757_v48 = vpop.f32.mrf.mxu3 }
 0x180   : > { %v763_v22 = vadd.f32 %v757_v48, %v684_v45 }
 0x181   : > { %v733_v49 = vpop.f32.mrf.mxu1 }
 0x182   : > { %vm766_vm4 = vcmp.ge.f32.partialorder %v763_v22, 0.0  ;;  %v769_v50 = vmul.f32 %v763_v22, %v2030_v59 }
 0x184   : > { %v825_v51 = vpop.f32.mrf.mxu0  ;;  %v772_v53 = vsel %vm766_vm4, %v763_v22, %v769_v50 }
 0x185   : > { %1534 = vst [vmem:[%s2037_s11 + $0x28] sm:$0xff] %v772_v53 }
 0x187   : > { %v759_v54 = vpop.f32.mrf.mxu3  ;;  %v851_v55 = vpop.f32.mrf.mxu2 }
 0x189   : > { %v838_v56 = vpop.f32.mrf.mxu1 }
 0x18c   : > { %v827_v57 = vpop.f32.mrf.mxu0 }
 0x18f   : > { %v853_v58 = vpop.f32.mrf.mxu2  ;;  %v897_v23 = vpop.f32.mrf.mxu3 }
 0x190   : > { %v898_v6 = vadd.f32 %v897_v23, %v825_v51 }
 0x191   : > { %v840_v60 = vpop.f32.mrf.mxu1 }
 0x194   : > { %v910_v24 = vpop.f32.mrf.mxu0 }
 0x195   : > { %v911_v5 = vadd.f32 %v910_v24, %v838_v56 }
 0x197   : > { %v899_v61 = vpop.f32.mrf.mxu3  ;;  %v973_v62 = vpop.f32.mrf.mxu2 }
 0x198   : > { %v1003_v10 = vadd.f32 %v973_v62, %v898_v6 }
 0x199   : > { %v923_v63 = vpop.f32.mrf.mxu1 }
 0x19a   : > { %v924_v19 = vadd.f32 %v923_v63, %v851_v55 }
 0x19c   : > { %v912_v1 = vpop.f32.mrf.mxu0 }
 0x19f   : > { %v975_v2 = vpop.f32.mrf.mxu2  ;;  %v986_v52 = vpop.f32.mrf.mxu3 }
 0x1a0   : > { %v1004_v7 = vadd.f32 %v986_v52, %v911_v5 }
 0x1a1   : > { %v925_v3 = vpop.f32.mrf.mxu1 }
 0x1a4   : > { %v999_v4 = vpop.f32.mrf.mxu0 }
 0x1a5   : > { %v1005_v21 = vadd.f32 %v999_v4, %v924_v19 }
 0x1a7   : > { %v988_v8 = vpop.f32.mrf.mxu3  ;;  %v1065_v9 = vpop.f32.mrf.mxu2 }
 0x1a8   : > { %v1083_v11 = vadd.f32 %v1065_v9, %v1004_v7 }
 0x1a9   : > { %v1052_v12 = vpop.f32.mrf.mxu1 }
 0x1aa   : > { %vm1086_vm5 = vcmp.ge.f32.partialorder %v1083_v11, 0.0  ;;  %v1089_v13 = vmul.f32 %v1083_v11, %v2030_v59  ;;  %v1082_v18 = vadd.f32 %v1052_v12, %v1003_v10 }
 0x1ac   : > { %v1001_v17 = vpop.f32.mrf.mxu0  ;;  %v1092_v20 = vsel %vm1086_vm5, %v1083_v11, %v1089_v13  ;;  %vm1085_vm6 = vcmp.ge.f32.partialorder %v1082_v18, 0.0  ;;  %v1088_v0 = vmul.f32 %v1082_v18, %v2030_v59 }
 0x1ad   : > { %1552 = vst [vmem:[%s2037_s11 + $0x38] sm:$0xff] %v1092_v20 }
 0x1ae   : > { %v1091_v25 = vsel %vm1085_vm6, %v1082_v18, %v1088_v0 }
 0x1af   : > { %1551 = vst [vmem:[%s2037_s11 + $0x30] sm:$0xff] %v1091_v25  ;;  %v1067_v26 = vpop.f32.mrf.mxu2  ;;  %v1078_v27 = vpop.f32.mrf.mxu3 }
 0x1b0   : > { %v1084_v28 = vadd.f32 %v1078_v27, %v1005_v21 }
 0x1b1   : > { %v1054_v29 = vpop.f32.mrf.mxu1 }
 0x1b2   : > { %vm1087_vm7 = vcmp.ge.f32.partialorder %v1084_v28, 0.0  ;;  %v1090_v30 = vmul.f32 %v1084_v28, %v2030_v59 }
 0x1b4   : > { %v1146_v31 = vpop.f32.mrf.mxu0  ;;  %v1093_v32 = vsel %vm1087_vm7, %v1084_v28, %v1090_v30 }
 0x1b5   : > { %1553 = vst [vmem:[%s2037_s11 + $0x40] sm:$0xff] %v1093_v32 }
 0x1b7   : > { %v1080_v33 = vpop.f32.mrf.mxu3  ;;  %v1172_v34 = vpop.f32.mrf.mxu2 }
 0x1b9   : > { %v1159_v35 = vpop.f32.mrf.mxu1 }
 0x1bc   : > { %v1148_v36 = vpop.f32.mrf.mxu0 }
 0x1bf   : > { %v1174_v37 = vpop.f32.mrf.mxu2  ;;  %v1217_v15 = vpop.f32.mrf.mxu3 }
 0x1c0   : > { %v1218_v47 = vadd.f32 %v1217_v15, %v1146_v31 }
 0x1c1   : > { %v1161_v38 = vpop.f32.mrf.mxu1 }
 0x1c4   : > { %v1230_v16 = vpop.f32.mrf.mxu0 }
 0x1c5   : > { %v1231_v46 = vadd.f32 %v1230_v16, %v1159_v35 }
 0x1c7   : > { %v1219_v39 = vpop.f32.mrf.mxu3  ;;  %v1293_v40 = vpop.f32.mrf.mxu2 }
 0x1c8   : > { %v1323_v50 = vadd.f32 %v1293_v40, %v1218_v47 }
 0x1c9   : > { %v1243_v41 = vpop.f32.mrf.mxu1 }
 0x1ca   : > { %v1244_v57 = vadd.f32 %v1243_v41, %v1172_v34 }
 0x1cc   : > { %v1232_v42 = vpop.f32.mrf.mxu0 }
 0x1cf   : > { %v1295_v43 = vpop.f32.mrf.mxu2  ;;  %v1306_v44 = vpop.f32.mrf.mxu3 }
 0x1d0   : > { %v1324_v48 = vadd.f32 %v1306_v44, %v1231_v46 }
 0x1d1   : > { %v1245_v14 = vpop.f32.mrf.mxu1 }
 0x1d4   : > { %v1319_v45 = vpop.f32.mrf.mxu0 }
 0x1d5   : > { %v1325_v60 = vadd.f32 %v1319_v45, %v1244_v57 }
 0x1d7   : > { %v1308_v22 = vpop.f32.mrf.mxu3  ;;  %v1385_v49 = vpop.f32.mrf.mxu2 }
 0x1d8   : > { %v1403_v51 = vadd.f32 %v1385_v49, %v1324_v48 }
 0x1d9   : > { %v1372_v53 = vpop.f32.mrf.mxu1 }
 0x1da   : > { %vm1406_vm8 = vcmp.ge.f32.partialorder %v1403_v51, 0.0  ;;  %v1409_v54 = vmul.f32 %v1403_v51, %v2030_v59  ;;  %v1402_v55 = vadd.f32 %v1372_v53, %v1323_v50 }
 0x1dc   : > { %v1321_v56 = vpop.f32.mrf.mxu0  ;;  %v1412_v58 = vsel %vm1406_vm8, %v1403_v51, %v1409_v54  ;;  %vm1405_vm9 = vcmp.ge.f32.partialorder %v1402_v55, 0.0  ;;  %v1408_v23 = vmul.f32 %v1402_v55, %v2030_v59 }
 0x1dd   : > { %1571 = vst [vmem:[%s2037_s11 + $0x50] sm:$0xff] %v1412_v58 }
 0x1de   : > { %v1411_v24 = vsel %vm1405_vm9, %v1402_v55, %v1408_v23 }
 0x1df   : > { %1570 = vst [vmem:[%s2037_s11 + $0x48] sm:$0xff] %v1411_v24  ;;  %v1398_v61 = vpop.f32.mrf.mxu3  ;;  %v1387_v62 = vpop.f32.mrf.mxu2 }
 0x1e0   : > { %v1404_v63 = vadd.f32 %v1398_v61, %v1325_v60 }
 0x1e1   : > { %v1374_v1 = vpop.f32.mrf.mxu1 }
 0x1e2   : > { %vm1407_vm10 = vcmp.ge.f32.partialorder %v1404_v63, 0.0  ;;  %v1410_v2 = vmul.f32 %v1404_v63, %v2030_v59 }
 0x1e4   : > { %v1413_v52 = vsel %vm1407_vm10, %v1404_v63, %v1410_v2 }
 0x1e5   : > { %1572 = vst [vmem:[%s2037_s11 + $0x58] sm:$0xff] %v1413_v52 }
 0x1e6   : > { %1660 = shalt.err (!%p1657_p3)
}
 0x1e7   : > { %s1710_s8 = smov 384   ;;  %s1711_s9 = smov 24   ;;  %v1400_v59 = vpop.f32.mrf.mxu3 }
 0x1e8   : > { %1579 = dma.vmem_to_hbm [thread:$0]  (%p1773_p5), %s1432_s2, 1536, %s1434_s26, %s1419_s27, %s1710_s8, %s1710_s8, %s1711_s9  }
 0x1e9 PF: > { %p1585_p4 = scmp.ge.s32.totalorder %s1695_s17, 2  ;;  %s1448_s10 = sand.u32 1, %s1683_s14  }
 0x1ea   : > { %s1449_s11 = scalar_lea.sflag [#allocation4], %s1448_s10 }
 0x1eb   : > { %p1582_p7 = pnand %p1585_p4, %p1777_p6 }
 0x1ed   : > { %p1583_p8 = pneg %p1582_p7 }
 0x1ef   : > { %1678 = dma.done.wait (%p1583_p8), %s1449_s11, 1536  }
 0x1f0   : > { %1680 = vsyncadd (%p1583_p8), %s1449_s11, 4294965760  ;;  %p14_p9 = scmp.ge.s32.totalorder %s1760_s19, 4   ;;  %s2108_s14 = smov %s1687_s15 }
 0x1f1   : > { %s2109_s15 = smov %s1691_s16  ;;  %s2110_s16 = smov %s1771_s22 }
 0x1f2   : > { %s2111_s17 = smov %s1760_s19  ;;  %16 = sbr.rel (!%p14_p9) target bundleno = 5 (0x5), region = 85 }
 0x1f7   :  { %1455 = vsyncpa [#allocation4], 1 }
 0x1f8   :  { %1457 = vsyncpa [#allocation4 + $0x1], 1 }

</bundles_post_ra>
